<compile_context>
chip_gen: v6e
topology: v6e:2x2x1
jax: 0.10.0
libtpu: 0.0.40
codegen_flags: <defaults>
</compile_context>

<pallas_src>
import functools

import jax
import jax.numpy as jnp
from jax.experimental import pallas as pl
from jax.experimental.pallas import tpu as pltpu


# ----------------------------------------------------------------------------
# Fused AttentionGate kernel: one grid step per batch sample.
# ----------------------------------------------------------------------------
def _attention_gate_kernel(w_ref, xp_ref, o_ref, *, C, H, W, K):
    """w_ref : SMEM (2*K*K,) f32  -- conv weight flattened as (in_ch, kh, kw)
       xp_ref: VMEM (1, C, H+2P, W+2P) -- zero-padded input sample (NCHW)
       o_ref : VMEM (1, H, W)"""
    x = xp_ref[0].astype(jnp.float32)              # (C, Hp, Wp)

    # Channel pooling: element-wise over the small leading axis (VPU).
    # Zero halo is preserved: max/mean over C of zeros == 0 == conv padding.
    mx = jnp.max(x, axis=0)                        # (Hp, Wp)
    mn = jnp.sum(x, axis=0) * (1.0 / C)            # (Hp, Wp)
    pooled = (mx, mn)

    # 5x5 conv (2 -> 1 channel) as K*K shifted multiply-adds per pooled map,
    # weights read as SMEM scalars and broadcast against the (H, W) plane.
    acc = jnp.zeros((H, W), jnp.float32)
    for c in range(2):
        pc = pooled[c]
        for ki in range(K):
            for kj in range(K):
                wv = w_ref[c * K * K + ki * K + kj]
                acc = acc + wv * pc[ki:ki + H, kj:kj + W]

    a = jnp.maximum(acc, 0.0)                      # ReLU
    o_ref[0] = (jax.nn.sigmoid(a) * a).astype(o_ref.dtype)


def attention_gate(x, weight, *, kernel_size=5):
    """x: (N, C, H, W) NCHW float; weight: (1, 2, K, K) (Conv2d(2,1,K,bias=False)).
       Returns (N, 1, H, W) = sigmoid(relu(conv(cat(max_c, mean_c)))) * relu(conv(...))."""
    N, C, H, W = x.shape
    K = kernel_size
    P = K // 2
    Hp, Wp = H + 2 * P, W + 2 * P

    # Halo-only zero pad so the kernel needs no boundary masks.
    xp = jnp.pad(x, ((0, 0), (0, 0), (P, P), (P, P)))
    w_flat = weight.reshape(2 * K * K).astype(jnp.float32)

    kern = functools.partial(_attention_gate_kernel, C=C, H=H, W=W, K=K)
    out = pl.pallas_call(
        kern,
        out_shape=jax.ShapeDtypeStruct((N, H, W), x.dtype),
        grid=(N,),
        in_specs=[
            pl.BlockSpec(memory_space=pltpu.MemorySpace.SMEM),      # 50 conv scalars
            pl.BlockSpec((1, C, Hp, Wp), lambda n: (n, 0, 0, 0)),   # one padded sample
        ],
        out_specs=pl.BlockSpec((1, H, W), lambda n: (n, 0, 0)),
        compiler_params=pltpu.CompilerParams(
            dimension_semantics=("parallel",),   # batch steps shard across TCs (v7x)
        ),
    )(w_flat, xp)
    return out.reshape(N, 1, H, W)


# ----------------------------------------------------------------------------
# Pure-JAX reference (same math, no Pallas) for validation.
# ----------------------------------------------------------------------------
def attention_gate_ref(x, weight):
    N, C, H, W = x.shape
    K = weight.shape[-1]
    P = K // 2
    pooled = jnp.stack([jnp.max(x, axis=1), jnp.mean(x, axis=1)], axis=1)  # (N,2,H,W)
    pp = jnp.pad(pooled, ((0, 0), (0, 0), (P, P), (P, P)))
    acc = jnp.zeros((N, H, W), jnp.float32)
    for c in range(2):
        for ki in range(K):
            for kj in range(K):
                acc = acc + weight[0, c, ki, kj] * pp[:, c, ki:ki + H, kj:kj + W]
    a = jnp.maximum(acc, 0.0)
    return (jax.nn.sigmoid(a) * a)[:, None]


if __name__ == "__main__":
    key = jax.random.PRNGKey(0)
    kx, kw = jax.random.split(key)
    N, C, H, W, K = 2, 4, 16, 16, 5

    x = jax.random.normal(kx, (N, C, H, W), jnp.float32)
    weight = jax.random.normal(kw, (1, 2, K, K), jnp.float32) * 0.2

    fwd = jax.jit(functools.partial(attention_gate, kernel_size=K))
    out = fwd(x, weight)
    jax.block_until_ready(out)

    ref = attention_gate_ref(x, weight)
    assert out.shape == (N, 1, H, W)
    assert bool(jnp.all(jnp.isfinite(out)))
    assert bool(jnp.allclose(out, ref, atol=1e-5, rtol=1e-5))
    print("KERNEL_OK")
</pallas_src>

<mosaic_0001>
module attributes {stable_mosaic.version = 11 : i64} {
  func.func @_attention_gate_kernel(%arg0: i32, %arg1: memref<50xf32, #tpu.memory_space<smem>>, %arg2: memref<1x4x20x20xf32, #tpu.memory_space<vmem>>, %arg3: memref<1x16x16xf32, #tpu.memory_space<vmem>>) attributes {dimension_semantics = [#tpu.dimension_semantics<parallel>], iteration_bounds = array<i64: 2>, scalar_prefetch = 0 : i64, scratch_operands = 0 : i64, tpu.core_type = #tpu.core_type<tc>, window_params = [{transform_indices = @transform_0, window_bounds = array<i64: 50>}, {transform_indices = @transform_1, window_bounds = array<i64: 1, 4, 20, 20>}, {transform_indices = @transform_2, window_bounds = array<i64: 1, 16, 16>}]} {
    %c0 = arith.constant 0 : index
    %c0_0 = arith.constant 0 : index
    %c0_1 = arith.constant 0 : index
    %c0_2 = arith.constant 0 : index
    %0 = vector.load %arg2[%c0, %c0_0, %c0_1, %c0_2] : memref<1x4x20x20xf32, #tpu.memory_space<vmem>>, vector<1x4x20x20xf32>
    %1 = vector.shape_cast %0 : vector<1x4x20x20xf32> to vector<4x20x20xf32>
    %cst = arith.constant dense<0xFF800000> : vector<20x20xf32>
    %2 = vector.multi_reduction <maximumf>, %1, %cst [0] : vector<4x20x20xf32> to vector<20x20xf32>
    %cst_3 = arith.constant dense<0.000000e+00> : vector<20x20xf32>
    %3 = vector.multi_reduction <add>, %1, %cst_3 [0] : vector<4x20x20xf32> to vector<20x20xf32>
    %cst_4 = arith.constant 2.500000e-01 : f32
    %4 = vector.broadcast %cst_4 : f32 to vector<20x20xf32>
    %5 = arith.mulf %3, %4 : vector<20x20xf32>
    %cst_5 = arith.constant 0.000000e+00 : f32
    %6 = vector.broadcast %cst_5 : f32 to vector<16x16xf32>
    %c0_6 = arith.constant 0 : index
    %7 = memref.load %arg1[%c0_6] : memref<50xf32, #tpu.memory_space<smem>>
    %8 = vector.extract_strided_slice %2 {offsets = [0, 0], sizes = [16, 16], strides = [1, 1]} : vector<20x20xf32> to vector<16x16xf32>
    %9 = vector.broadcast %7 : f32 to vector<16x16xf32>
    %10 = arith.mulf %9, %8 : vector<16x16xf32>
    %11 = arith.addf %6, %10 : vector<16x16xf32>
    %c1 = arith.constant 1 : index
    %12 = memref.load %arg1[%c1] : memref<50xf32, #tpu.memory_space<smem>>
    %13 = vector.extract_strided_slice %2 {offsets = [0, 1], sizes = [16, 16], strides = [1, 1]} : vector<20x20xf32> to vector<16x16xf32>
    %14 = vector.broadcast %12 : f32 to vector<16x16xf32>
    %15 = arith.mulf %14, %13 : vector<16x16xf32>
    %16 = arith.addf %11, %15 : vector<16x16xf32>
    %c2 = arith.constant 2 : index
    %17 = memref.load %arg1[%c2] : memref<50xf32, #tpu.memory_space<smem>>
    %18 = vector.extract_strided_slice %2 {offsets = [0, 2], sizes = [16, 16], strides = [1, 1]} : vector<20x20xf32> to vector<16x16xf32>
    %19 = vector.broadcast %17 : f32 to vector<16x16xf32>
    %20 = arith.mulf %19, %18 : vector<16x16xf32>
    %21 = arith.addf %16, %20 : vector<16x16xf32>
    %c3 = arith.constant 3 : index
    %22 = memref.load %arg1[%c3] : memref<50xf32, #tpu.memory_space<smem>>
    %23 = vector.extract_strided_slice %2 {offsets = [0, 3], sizes = [16, 16], strides = [1, 1]} : vector<20x20xf32> to vector<16x16xf32>
    %24 = vector.broadcast %22 : f32 to vector<16x16xf32>
    %25 = arith.mulf %24, %23 : vector<16x16xf32>
    %26 = arith.addf %21, %25 : vector<16x16xf32>
    %c4 = arith.constant 4 : index
    %27 = memref.load %arg1[%c4] : memref<50xf32, #tpu.memory_space<smem>>
    %28 = vector.extract_strided_slice %2 {offsets = [0, 4], sizes = [16, 16], strides = [1, 1]} : vector<20x20xf32> to vector<16x16xf32>
    %29 = vector.broadcast %27 : f32 to vector<16x16xf32>
    %30 = arith.mulf %29, %28 : vector<16x16xf32>
    %31 = arith.addf %26, %30 : vector<16x16xf32>
    %c5 = arith.constant 5 : index
    %32 = memref.load %arg1[%c5] : memref<50xf32, #tpu.memory_space<smem>>
    %33 = vector.extract_strided_slice %2 {offsets = [1, 0], sizes = [16, 16], strides = [1, 1]} : vector<20x20xf32> to vector<16x16xf32>
    %34 = vector.broadcast %32 : f32 to vector<16x16xf32>
    %35 = arith.mulf %34, %33 : vector<16x16xf32>
    %36 = arith.addf %31, %35 : vector<16x16xf32>
    %c6 = arith.constant 6 : index
    %37 = memref.load %arg1[%c6] : memref<50xf32, #tpu.memory_space<smem>>
    %38 = vector.extract_strided_slice %2 {offsets = [1, 1], sizes = [16, 16], strides = [1, 1]} : vector<20x20xf32> to vector<16x16xf32>
    %39 = vector.broadcast %37 : f32 to vector<16x16xf32>
    %40 = arith.mulf %39, %38 : vector<16x16xf32>
    %41 = arith.addf %36, %40 : vector<16x16xf32>
    %c7 = arith.constant 7 : index
    %42 = memref.load %arg1[%c7] : memref<50xf32, #tpu.memory_space<smem>>
    %43 = vector.extract_strided_slice %2 {offsets = [1, 2], sizes = [16, 16], strides = [1, 1]} : vector<20x20xf32> to vector<16x16xf32>
    %44 = vector.broadcast %42 : f32 to vector<16x16xf32>
    %45 = arith.mulf %44, %43 : vector<16x16xf32>
    %46 = arith.addf %41, %45 : vector<16x16xf32>
    %c8 = arith.constant 8 : index
    %47 = memref.load %arg1[%c8] : memref<50xf32, #tpu.memory_space<smem>>
    %48 = vector.extract_strided_slice %2 {offsets = [1, 3], sizes = [16, 16], strides = [1, 1]} : vector<20x20xf32> to vector<16x16xf32>
    %49 = vector.broadcast %47 : f32 to vector<16x16xf32>
    %50 = arith.mulf %49, %48 : vector<16x16xf32>
    %51 = arith.addf %46, %50 : vector<16x16xf32>
    %c9 = arith.constant 9 : index
    %52 = memref.load %arg1[%c9] : memref<50xf32, #tpu.memory_space<smem>>
    %53 = vector.extract_strided_slice %2 {offsets = [1, 4], sizes = [16, 16], strides = [1, 1]} : vector<20x20xf32> to vector<16x16xf32>
    %54 = vector.broadcast %52 : f32 to vector<16x16xf32>
    %55 = arith.mulf %54, %53 : vector<16x16xf32>
    %56 = arith.addf %51, %55 : vector<16x16xf32>
    %c10 = arith.constant 10 : index
    %57 = memref.load %arg1[%c10] : memref<50xf32, #tpu.memory_space<smem>>
    %58 = vector.extract_strided_slice %2 {offsets = [2, 0], sizes = [16, 16], strides = [1, 1]} : vector<20x20xf32> to vector<16x16xf32>
    %59 = vector.broadcast %57 : f32 to vector<16x16xf32>
    %60 = arith.mulf %59, %58 : vector<16x16xf32>
    %61 = arith.addf %56, %60 : vector<16x16xf32>
    %c11 = arith.constant 11 : index
    %62 = memref.load %arg1[%c11] : memref<50xf32, #tpu.memory_space<smem>>
    %63 = vector.extract_strided_slice %2 {offsets = [2, 1], sizes = [16, 16], strides = [1, 1]} : vector<20x20xf32> to vector<16x16xf32>
    %64 = vector.broadcast %62 : f32 to vector<16x16xf32>
    %65 = arith.mulf %64, %63 : vector<16x16xf32>
    %66 = arith.addf %61, %65 : vector<16x16xf32>
    %c12 = arith.constant 12 : index
    %67 = memref.load %arg1[%c12] : memref<50xf32, #tpu.memory_space<smem>>
    %68 = vector.extract_strided_slice %2 {offsets = [2, 2], sizes = [16, 16], strides = [1, 1]} : vector<20x20xf32> to vector<16x16xf32>
    %69 = vector.broadcast %67 : f32 to vector<16x16xf32>
    %70 = arith.mulf %69, %68 : vector<16x16xf32>
    %71 = arith.addf %66, %70 : vector<16x16xf32>
    %c13 = arith.constant 13 : index
    %72 = memref.load %arg1[%c13] : memref<50xf32, #tpu.memory_space<smem>>
    %73 = vector.extract_strided_slice %2 {offsets = [2, 3], sizes = [16, 16], strides = [1, 1]} : vector<20x20xf32> to vector<16x16xf32>
    %74 = vector.broadcast %72 : f32 to vector<16x16xf32>
    %75 = arith.mulf %74, %73 : vector<16x16xf32>
    %76 = arith.addf %71, %75 : vector<16x16xf32>
    %c14 = arith.constant 14 : index
    %77 = memref.load %arg1[%c14] : memref<50xf32, #tpu.memory_space<smem>>
    %78 = vector.extract_strided_slice %2 {offsets = [2, 4], sizes = [16, 16], strides = [1, 1]} : vector<20x20xf32> to vector<16x16xf32>
    %79 = vector.broadcast %77 : f32 to vector<16x16xf32>
    %80 = arith.mulf %79, %78 : vector<16x16xf32>
    %81 = arith.addf %76, %80 : vector<16x16xf32>
    %c15 = arith.constant 15 : index
    %82 = memref.load %arg1[%c15] : memref<50xf32, #tpu.memory_space<smem>>
    %83 = vector.extract_strided_slice %2 {offsets = [3, 0], sizes = [16, 16], strides = [1, 1]} : vector<20x20xf32> to vector<16x16xf32>
    %84 = vector.broadcast %82 : f32 to vector<16x16xf32>
    %85 = arith.mulf %84, %83 : vector<16x16xf32>
    %86 = arith.addf %81, %85 : vector<16x16xf32>
    %c16 = arith.constant 16 : index
    %87 = memref.load %arg1[%c16] : memref<50xf32, #tpu.memory_space<smem>>
    %88 = vector.extract_strided_slice %2 {offsets = [3, 1], sizes = [16, 16], strides = [1, 1]} : vector<20x20xf32> to vector<16x16xf32>
    %89 = vector.broadcast %87 : f32 to vector<16x16xf32>
    %90 = arith.mulf %89, %88 : vector<16x16xf32>
    %91 = arith.addf %86, %90 : vector<16x16xf32>
    %c17 = arith.constant 17 : index
    %92 = memref.load %arg1[%c17] : memref<50xf32, #tpu.memory_space<smem>>
    %93 = vector.extract_strided_slice %2 {offsets = [3, 2], sizes = [16, 16], strides = [1, 1]} : vector<20x20xf32> to vector<16x16xf32>
    %94 = vector.broadcast %92 : f32 to vector<16x16xf32>
    %95 = arith.mulf %94, %93 : vector<16x16xf32>
    %96 = arith.addf %91, %95 : vector<16x16xf32>
    %c18 = arith.constant 18 : index
    %97 = memref.load %arg1[%c18] : memref<50xf32, #tpu.memory_space<smem>>
    %98 = vector.extract_strided_slice %2 {offsets = [3, 3], sizes = [16, 16], strides = [1, 1]} : vector<20x20xf32> to vector<16x16xf32>
    %99 = vector.broadcast %97 : f32 to vector<16x16xf32>
    %100 = arith.mulf %99, %98 : vector<16x16xf32>
    %101 = arith.addf %96, %100 : vector<16x16xf32>
    %c19 = arith.constant 19 : index
    %102 = memref.load %arg1[%c19] : memref<50xf32, #tpu.memory_space<smem>>
    %103 = vector.extract_strided_slice %2 {offsets = [3, 4], sizes = [16, 16], strides = [1, 1]} : vector<20x20xf32> to vector<16x16xf32>
    %104 = vector.broadcast %102 : f32 to vector<16x16xf32>
    %105 = arith.mulf %104, %103 : vector<16x16xf32>
    %106 = arith.addf %101, %105 : vector<16x16xf32>
    %c20 = arith.constant 20 : index
    %107 = memref.load %arg1[%c20] : memref<50xf32, #tpu.memory_space<smem>>
    %108 = vector.extract_strided_slice %2 {offsets = [4, 0], sizes = [16, 16], strides = [1, 1]} : vector<20x20xf32> to vector<16x16xf32>
    %109 = vector.broadcast %107 : f32 to vector<16x16xf32>
    %110 = arith.mulf %109, %108 : vector<16x16xf32>
    %111 = arith.addf %106, %110 : vector<16x16xf32>
    %c21 = arith.constant 21 : index
    %112 = memref.load %arg1[%c21] : memref<50xf32, #tpu.memory_space<smem>>
    %113 = vector.extract_strided_slice %2 {offsets = [4, 1], sizes = [16, 16], strides = [1, 1]} : vector<20x20xf32> to vector<16x16xf32>
    %114 = vector.broadcast %112 : f32 to vector<16x16xf32>
    %115 = arith.mulf %114, %113 : vector<16x16xf32>
    %116 = arith.addf %111, %115 : vector<16x16xf32>
    %c22 = arith.constant 22 : index
    %117 = memref.load %arg1[%c22] : memref<50xf32, #tpu.memory_space<smem>>
    %118 = vector.extract_strided_slice %2 {offsets = [4, 2], sizes = [16, 16], strides = [1, 1]} : vector<20x20xf32> to vector<16x16xf32>
    %119 = vector.broadcast %117 : f32 to vector<16x16xf32>
    %120 = arith.mulf %119, %118 : vector<16x16xf32>
    %121 = arith.addf %116, %120 : vector<16x16xf32>
    %c23 = arith.constant 23 : index
    %122 = memref.load %arg1[%c23] : memref<50xf32, #tpu.memory_space<smem>>
    %123 = vector.extract_strided_slice %2 {offsets = [4, 3], sizes = [16, 16], strides = [1, 1]} : vector<20x20xf32> to vector<16x16xf32>
    %124 = vector.broadcast %122 : f32 to vector<16x16xf32>
    %125 = arith.mulf %124, %123 : vector<16x16xf32>
    %126 = arith.addf %121, %125 : vector<16x16xf32>
    %c24 = arith.constant 24 : index
    %127 = memref.load %arg1[%c24] : memref<50xf32, #tpu.memory_space<smem>>
    %128 = vector.extract_strided_slice %2 {offsets = [4, 4], sizes = [16, 16], strides = [1, 1]} : vector<20x20xf32> to vector<16x16xf32>
    %129 = vector.broadcast %127 : f32 to vector<16x16xf32>
    %130 = arith.mulf %129, %128 : vector<16x16xf32>
    %131 = arith.addf %126, %130 : vector<16x16xf32>
    %c25 = arith.constant 25 : index
    %132 = memref.load %arg1[%c25] : memref<50xf32, #tpu.memory_space<smem>>
    %133 = vector.extract_strided_slice %5 {offsets = [0, 0], sizes = [16, 16], strides = [1, 1]} : vector<20x20xf32> to vector<16x16xf32>
    %134 = vector.broadcast %132 : f32 to vector<16x16xf32>
    %135 = arith.mulf %134, %133 : vector<16x16xf32>
    %136 = arith.addf %131, %135 : vector<16x16xf32>
    %c26 = arith.constant 26 : index
    %137 = memref.load %arg1[%c26] : memref<50xf32, #tpu.memory_space<smem>>
    %138 = vector.extract_strided_slice %5 {offsets = [0, 1], sizes = [16, 16], strides = [1, 1]} : vector<20x20xf32> to vector<16x16xf32>
    %139 = vector.broadcast %137 : f32 to vector<16x16xf32>
    %140 = arith.mulf %139, %138 : vector<16x16xf32>
    %141 = arith.addf %136, %140 : vector<16x16xf32>
    %c27 = arith.constant 27 : index
    %142 = memref.load %arg1[%c27] : memref<50xf32, #tpu.memory_space<smem>>
    %143 = vector.extract_strided_slice %5 {offsets = [0, 2], sizes = [16, 16], strides = [1, 1]} : vector<20x20xf32> to vector<16x16xf32>
    %144 = vector.broadcast %142 : f32 to vector<16x16xf32>
    %145 = arith.mulf %144, %143 : vector<16x16xf32>
    %146 = arith.addf %141, %145 : vector<16x16xf32>
    %c28 = arith.constant 28 : index
    %147 = memref.load %arg1[%c28] : memref<50xf32, #tpu.memory_space<smem>>
    %148 = vector.extract_strided_slice %5 {offsets = [0, 3], sizes = [16, 16], strides = [1, 1]} : vector<20x20xf32> to vector<16x16xf32>
    %149 = vector.broadcast %147 : f32 to vector<16x16xf32>
    %150 = arith.mulf %149, %148 : vector<16x16xf32>
    %151 = arith.addf %146, %150 : vector<16x16xf32>
    %c29 = arith.constant 29 : index
    %152 = memref.load %arg1[%c29] : memref<50xf32, #tpu.memory_space<smem>>
    %153 = vector.extract_strided_slice %5 {offsets = [0, 4], sizes = [16, 16], strides = [1, 1]} : vector<20x20xf32> to vector<16x16xf32>
    %154 = vector.broadcast %152 : f32 to vector<16x16xf32>
    %155 = arith.mulf %154, %153 : vector<16x16xf32>
    %156 = arith.addf %151, %155 : vector<16x16xf32>
    %c30 = arith.constant 30 : index
    %157 = memref.load %arg1[%c30] : memref<50xf32, #tpu.memory_space<smem>>
    %158 = vector.extract_strided_slice %5 {offsets = [1, 0], sizes = [16, 16], strides = [1, 1]} : vector<20x20xf32> to vector<16x16xf32>
    %159 = vector.broadcast %157 : f32 to vector<16x16xf32>
    %160 = arith.mulf %159, %158 : vector<16x16xf32>
    %161 = arith.addf %156, %160 : vector<16x16xf32>
    %c31 = arith.constant 31 : index
    %162 = memref.load %arg1[%c31] : memref<50xf32, #tpu.memory_space<smem>>
    %163 = vector.extract_strided_slice %5 {offsets = [1, 1], sizes = [16, 16], strides = [1, 1]} : vector<20x20xf32> to vector<16x16xf32>
    %164 = vector.broadcast %162 : f32 to vector<16x16xf32>
    %165 = arith.mulf %164, %163 : vector<16x16xf32>
    %166 = arith.addf %161, %165 : vector<16x16xf32>
    %c32 = arith.constant 32 : index
    %167 = memref.load %arg1[%c32] : memref<50xf32, #tpu.memory_space<smem>>
    %168 = vector.extract_strided_slice %5 {offsets = [1, 2], sizes = [16, 16], strides = [1, 1]} : vector<20x20xf32> to vector<16x16xf32>
    %169 = vector.broadcast %167 : f32 to vector<16x16xf32>
    %170 = arith.mulf %169, %168 : vector<16x16xf32>
    %171 = arith.addf %166, %170 : vector<16x16xf32>
    %c33 = arith.constant 33 : index
    %172 = memref.load %arg1[%c33] : memref<50xf32, #tpu.memory_space<smem>>
    %173 = vector.extract_strided_slice %5 {offsets = [1, 3], sizes = [16, 16], strides = [1, 1]} : vector<20x20xf32> to vector<16x16xf32>
    %174 = vector.broadcast %172 : f32 to vector<16x16xf32>
    %175 = arith.mulf %174, %173 : vector<16x16xf32>
    %176 = arith.addf %171, %175 : vector<16x16xf32>
    %c34 = arith.constant 34 : index
    %177 = memref.load %arg1[%c34] : memref<50xf32, #tpu.memory_space<smem>>
    %178 = vector.extract_strided_slice %5 {offsets = [1, 4], sizes = [16, 16], strides = [1, 1]} : vector<20x20xf32> to vector<16x16xf32>
    %179 = vector.broadcast %177 : f32 to vector<16x16xf32>
    %180 = arith.mulf %179, %178 : vector<16x16xf32>
    %181 = arith.addf %176, %180 : vector<16x16xf32>
    %c35 = arith.constant 35 : index
    %182 = memref.load %arg1[%c35] : memref<50xf32, #tpu.memory_space<smem>>
    %183 = vector.extract_strided_slice %5 {offsets = [2, 0], sizes = [16, 16], strides = [1, 1]} : vector<20x20xf32> to vector<16x16xf32>
    %184 = vector.broadcast %182 : f32 to vector<16x16xf32>
    %185 = arith.mulf %184, %183 : vector<16x16xf32>
    %186 = arith.addf %181, %185 : vector<16x16xf32>
    %c36 = arith.constant 36 : index
    %187 = memref.load %arg1[%c36] : memref<50xf32, #tpu.memory_space<smem>>
    %188 = vector.extract_strided_slice %5 {offsets = [2, 1], sizes = [16, 16], strides = [1, 1]} : vector<20x20xf32> to vector<16x16xf32>
    %189 = vector.broadcast %187 : f32 to vector<16x16xf32>
    %190 = arith.mulf %189, %188 : vector<16x16xf32>
    %191 = arith.addf %186, %190 : vector<16x16xf32>
    %c37 = arith.constant 37 : index
    %192 = memref.load %arg1[%c37] : memref<50xf32, #tpu.memory_space<smem>>
    %193 = vector.extract_strided_slice %5 {offsets = [2, 2], sizes = [16, 16], strides = [1, 1]} : vector<20x20xf32> to vector<16x16xf32>
    %194 = vector.broadcast %192 : f32 to vector<16x16xf32>
    %195 = arith.mulf %194, %193 : vector<16x16xf32>
    %196 = arith.addf %191, %195 : vector<16x16xf32>
    %c38 = arith.constant 38 : index
    %197 = memref.load %arg1[%c38] : memref<50xf32, #tpu.memory_space<smem>>
    %198 = vector.extract_strided_slice %5 {offsets = [2, 3], sizes = [16, 16], strides = [1, 1]} : vector<20x20xf32> to vector<16x16xf32>
    %199 = vector.broadcast %197 : f32 to vector<16x16xf32>
    %200 = arith.mulf %199, %198 : vector<16x16xf32>
    %201 = arith.addf %196, %200 : vector<16x16xf32>
    %c39 = arith.constant 39 : index
    %202 = memref.load %arg1[%c39] : memref<50xf32, #tpu.memory_space<smem>>
    %203 = vector.extract_strided_slice %5 {offsets = [2, 4], sizes = [16, 16], strides = [1, 1]} : vector<20x20xf32> to vector<16x16xf32>
    %204 = vector.broadcast %202 : f32 to vector<16x16xf32>
    %205 = arith.mulf %204, %203 : vector<16x16xf32>
    %206 = arith.addf %201, %205 : vector<16x16xf32>
    %c40 = arith.constant 40 : index
    %207 = memref.load %arg1[%c40] : memref<50xf32, #tpu.memory_space<smem>>
    %208 = vector.extract_strided_slice %5 {offsets = [3, 0], sizes = [16, 16], strides = [1, 1]} : vector<20x20xf32> to vector<16x16xf32>
    %209 = vector.broadcast %207 : f32 to vector<16x16xf32>
    %210 = arith.mulf %209, %208 : vector<16x16xf32>
    %211 = arith.addf %206, %210 : vector<16x16xf32>
    %c41 = arith.constant 41 : index
    %212 = memref.load %arg1[%c41] : memref<50xf32, #tpu.memory_space<smem>>
    %213 = vector.extract_strided_slice %5 {offsets = [3, 1], sizes = [16, 16], strides = [1, 1]} : vector<20x20xf32> to vector<16x16xf32>
    %214 = vector.broadcast %212 : f32 to vector<16x16xf32>
    %215 = arith.mulf %214, %213 : vector<16x16xf32>
    %216 = arith.addf %211, %215 : vector<16x16xf32>
    %c42 = arith.constant 42 : index
    %217 = memref.load %arg1[%c42] : memref<50xf32, #tpu.memory_space<smem>>
    %218 = vector.extract_strided_slice %5 {offsets = [3, 2], sizes = [16, 16], strides = [1, 1]} : vector<20x20xf32> to vector<16x16xf32>
    %219 = vector.broadcast %217 : f32 to vector<16x16xf32>
    %220 = arith.mulf %219, %218 : vector<16x16xf32>
    %221 = arith.addf %216, %220 : vector<16x16xf32>
    %c43 = arith.constant 43 : index
    %222 = memref.load %arg1[%c43] : memref<50xf32, #tpu.memory_space<smem>>
    %223 = vector.extract_strided_slice %5 {offsets = [3, 3], sizes = [16, 16], strides = [1, 1]} : vector<20x20xf32> to vector<16x16xf32>
    %224 = vector.broadcast %222 : f32 to vector<16x16xf32>
    %225 = arith.mulf %224, %223 : vector<16x16xf32>
    %226 = arith.addf %221, %225 : vector<16x16xf32>
    %c44 = arith.constant 44 : index
    %227 = memref.load %arg1[%c44] : memref<50xf32, #tpu.memory_space<smem>>
    %228 = vector.extract_strided_slice %5 {offsets = [3, 4], sizes = [16, 16], strides = [1, 1]} : vector<20x20xf32> to vector<16x16xf32>
    %229 = vector.broadcast %227 : f32 to vector<16x16xf32>
    %230 = arith.mulf %229, %228 : vector<16x16xf32>
    %231 = arith.addf %226, %230 : vector<16x16xf32>
    %c45 = arith.constant 45 : index
    %232 = memref.load %arg1[%c45] : memref<50xf32, #tpu.memory_space<smem>>
    %233 = vector.extract_strided_slice %5 {offsets = [4, 0], sizes = [16, 16], strides = [1, 1]} : vector<20x20xf32> to vector<16x16xf32>
    %234 = vector.broadcast %232 : f32 to vector<16x16xf32>
    %235 = arith.mulf %234, %233 : vector<16x16xf32>
    %236 = arith.addf %231, %235 : vector<16x16xf32>
    %c46 = arith.constant 46 : index
    %237 = memref.load %arg1[%c46] : memref<50xf32, #tpu.memory_space<smem>>
    %238 = vector.extract_strided_slice %5 {offsets = [4, 1], sizes = [16, 16], strides = [1, 1]} : vector<20x20xf32> to vector<16x16xf32>
    %239 = vector.broadcast %237 : f32 to vector<16x16xf32>
    %240 = arith.mulf %239, %238 : vector<16x16xf32>
    %241 = arith.addf %236, %240 : vector<16x16xf32>
    %c47 = arith.constant 47 : index
    %242 = memref.load %arg1[%c47] : memref<50xf32, #tpu.memory_space<smem>>
    %243 = vector.extract_strided_slice %5 {offsets = [4, 2], sizes = [16, 16], strides = [1, 1]} : vector<20x20xf32> to vector<16x16xf32>
    %244 = vector.broadcast %242 : f32 to vector<16x16xf32>
    %245 = arith.mulf %244, %243 : vector<16x16xf32>
    %246 = arith.addf %241, %245 : vector<16x16xf32>
    %c48 = arith.constant 48 : index
    %247 = memref.load %arg1[%c48] : memref<50xf32, #tpu.memory_space<smem>>
    %248 = vector.extract_strided_slice %5 {offsets = [4, 3], sizes = [16, 16], strides = [1, 1]} : vector<20x20xf32> to vector<16x16xf32>
    %249 = vector.broadcast %247 : f32 to vector<16x16xf32>
    %250 = arith.mulf %249, %248 : vector<16x16xf32>
    %251 = arith.addf %246, %250 : vector<16x16xf32>
    %c49 = arith.constant 49 : index
    %252 = memref.load %arg1[%c49] : memref<50xf32, #tpu.memory_space<smem>>
    %253 = vector.extract_strided_slice %5 {offsets = [4, 4], sizes = [16, 16], strides = [1, 1]} : vector<20x20xf32> to vector<16x16xf32>
    %254 = vector.broadcast %252 : f32 to vector<16x16xf32>
    %255 = arith.mulf %254, %253 : vector<16x16xf32>
    %256 = arith.addf %251, %255 : vector<16x16xf32>
    %cst_7 = arith.constant 0.000000e+00 : f32
    %257 = vector.broadcast %cst_7 : f32 to vector<16x16xf32>
    %258 = arith.maximumf %256, %257 : vector<16x16xf32>
    %259 = arith.negf %258 : vector<16x16xf32>
    %260 = math.exp %259 : vector<16x16xf32>
    %cst_8 = arith.constant 1.000000e+00 : f32
    %261 = vector.broadcast %cst_8 : f32 to vector<16x16xf32>
    %262 = arith.addf %261, %260 : vector<16x16xf32>
    %263 = arith.divf %261, %262 : vector<16x16xf32>
    %264 = arith.mulf %263, %258 : vector<16x16xf32>
    %c0_9 = arith.constant 0 : index
    %c0_10 = arith.constant 0 : index
    %c0_11 = arith.constant 0 : index
    %265 = vector.load %arg3[%c0_9, %c0_10, %c0_11] : memref<1x16x16xf32, #tpu.memory_space<vmem>>, vector<1x16x16xf32>
    %266 = vector.shape_cast %265 : vector<1x16x16xf32> to vector<16x16xf32>
    %267 = vector.shape_cast %264 : vector<16x16xf32> to vector<1x16x16xf32>
    tpu.vector_store %arg3[%c0_9, %c0_10, %c0_11], %267 {strides = array<i32>} : memref<1x16x16xf32, #tpu.memory_space<vmem>>, vector<1x16x16xf32>,
    return
  }
  func.func @transform_0(%arg0: i32) -> i32 {
    %c0_i32 = arith.constant 0 : i32
    %c0_i32_0 = arith.constant 0 : i32
    return %c0_i32 : i32
  }
  func.func @transform_1(%arg0: i32) -> (i32, i32, i32, i32) {
    %c0_i32 = arith.constant 0 : i32
    %c0_i32_0 = arith.constant 0 : i32
    %c0_i32_1 = arith.constant 0 : i32
    %c0_i32_2 = arith.constant 0 : i32
    return %arg0, %c0_i32, %c0_i32_0, %c0_i32_1 : i32, i32, i32, i32
  }
  func.func @transform_2(%arg0: i32) -> (i32, i32, i32) {
    %c0_i32 = arith.constant 0 : i32
    %c0_i32_0 = arith.constant 0 : i32
    %c0_i32_1 = arith.constant 0 : i32
    return %arg0, %c0_i32, %c0_i32_0 : i32, i32, i32
  }
}

</mosaic_0001>

<bundles_post_ra>
// kernel: attention_gate.1
= control target key start
LH: loop header
LB: loop body
LE: loop exit
PB: predicated region body
PF: predicated region fallthrough
CT: control target
= control target key end

     0   :  { %7 = vsyncpa [#allocation4], 0  ;;  %s2087_s0 = inlined_call_operand.vmem [shape: f32[50], index: 0, kind: input, shape index: {}]   ;;  %s2088_s1 = inlined_call_operand.vmem [shape: f32[2,4,20,20], index: 1, kind: input, shape index: {}]   ;;  %s2089_s2 = inlined_call_operand.hbm [shape: f32[2,16,16], index: 2, kind: output, shape index: {}]  }
   0x1   :  { %8 = vsyncpa [#allocation3], 0 }
   0x2   :  { %10 = vsyncpa [#allocation3 + $0x1], 0  ;;  %s1492_s9 = smov 0   ;;  %s1494_s10 = smov 0  }
   0x3   :  { %s1496_s11 = smov 0   ;;  %s1498_s12 = smov 0  }
   0x4 LB: > { %s1513_s13 = sadd.s32 4294967295, %s1467_s12   ;;  %s1258_s14 = sadd.s32 4294967294, %s1467_s12   ;;  %s1467_s12 = sphi %s1498_s12, %s2096_s12   ;;  %s1463_s11 = sphi %s1496_s11, %s2095_s11   ;;  %s1459_s10 = sphi %s1494_s10, %s2094_s10   ;;  %s1455_s9 = sphi %s1492_s9, %s2093_s9  }
   0x5   : > { %s1517_s15 = sadd.s32 1, %s1467_s12   ;;  %s70_s16 = sadd.s32 1, %s1463_s11 }
   0x6   : > { %s67_s17 = ssub.s32 %s1467_s12, %s1517_s15  ;;  %p80_p0 = scmp.ne.s32.totalorder %s1463_s11, %s1459_s10 }
   0x7   : > { %p68_p1 = scmp.eq.s32.totalorder %s67_s17, 0  ;;  %p81_p2 = scmp.eq.s32.totalorder %s1513_s13, 1 }
   0x8   : > { %p86_p3 = scmp.ne.s32.totalorder %s1459_s10, %s1455_s9  ;;  %p87_p4 = scmp.eq.s32.totalorder %s1258_s14, 1 }
   0x9   : > { %s1528_s18 = scalar_select %p68_p1, %s1463_s11, %s70_s16  }
   0xa   : > { %p1530_p5 = por %p81_p2, %p80_p0  ;;  %p1534_p6 = por %p87_p4, %p86_p3 }
   0xb   : > { %p1259_p7 = scmp.ge.s32.totalorder %s1467_s12, 1  ;;  %p94_p8 = scmp.lt.s32.totalorder %s1467_s12, 3 }
   0xc   : > { %p1338_p9 = scmp.eq.s32.totalorder %s1513_s13, 0  ;;  %s107_s24 = sshll.u32 %s2087_s0, 4  ;;  %s108_s24 = int_to_ptr.vmem [resolvable:$true] %s107_s24 }
   0xd   : > { %p1541_p10 = pnand %p1259_p7, %p94_p8  ;;  %s1388_s25 = scalar_lea.vmem %s108_s24, 16 }
   0xe   : > { %p1389_p13 = scmp.ne.s32.totalorder %s108_s24, %s1388_s25  ;;  %p1396_p3 = scmp.lt.s32.totalorder %s108_s24, %s108_s24 }
   0xf   : > { %p1330_p11 = pneg %p1541_p10  ;;  %p1397_p4 = scmp.lt.s32.totalorder %s1388_s25, %s1388_s25 }
  0x11   : > { %p1331_p12 = pnand %p1338_p9, %p1330_p11  ;;  %p1398_p7 = por %p1397_p4, %p1396_p3 }
  0x13   : > { %p1390_p0 = pneg %p1331_p12 }
  0x15   : > { %p1391_p1 = pnand %p1390_p0, %p1389_p13 }
  0x17   : > { %p1392_p2 = pneg %p1391_p1 }
  0x19   : > { %p1399_p8 = pnand %p1398_p7, %p1392_p2 }
  0x1b   : > { %1402 = shalt.err (!%p1399_p8)
}
  0x1c   : > { %s1469_s26 = smov [#allocation2]   ;;  %128 = sbr.rel (%p1541_p10) target bundleno = 377 (0x179), region = 28 }
  0x1d   : > { %1333 = dma.vmem_to_smem (!%p1331_p12), %s108_s24, 16, %s1469_s26, [#allocation4]  }
  0x21   : > { %1446 = dma.done.wait (%p1338_p9), [#allocation4], 16  }
  0x22   : > { %1448 = vsyncadd (%p1338_p9), [#allocation4], 4294967280 }
  0x23   : > { %134 = sfence }
  0x24   : > { %p151_p11 = scmp.lt.s32.totalorder %s1513_s13, 1  ;;  %s1559_s27 = sld [smem:[#allocation2 + $0x2]]  ;;  %vm168_vm0 = vcmask 162816   ;;  %vm183_vm1 = vcmask 158720   ;;  %vm285_vm2 = vcmask 1046528   ;;  %vm387_vm3 = vcmask 1045504  }
  0x25   : > { %s1562_s30 = sld [smem:[#allocation2 + $0x1]]  ;;  %s1470_s16 = smov 126   ;;  %vm489_vm4 = vcmask 1044480   ;;  %vm591_vm5 = vcmask 1043456   ;;  %vm1167_vm6 = vcmask 130048  }
  0x26   : > { %s152_s28 = scalar_select %p151_p11, %s1513_s13, 1 }
  0x27   : > { %s1569_s6 = sld [smem:[#allocation2 + $0x3]]  ;;  %s1471_s17 = smov 127  }
  0x28   : > { %s1323_s29 = smul.u32 96, %s152_s28  ;;  %s1574_s7 = sld [smem:[#allocation2 + $0x6]] }
  0x29   : > { %s1625_s8 = sld [smem:[#allocation2 + $0x4]]  ;;  %s1472_s23 = smov 125  }
  0x2a   : > { %s1567_s5 = scalar_lea.vmem %s2088_s1, %s1323_s29  ;;  %v236_v9 = vstv %s1559_s27  ;;  %s1272_s14 = sld [smem:[#allocation2 + $0x7]] }
  0x2b   : > { %v156_v0 = vld [vmem:[%s1567_s5] sm:$0xff]  ;;  %v157_v1 = vld [vmem:[%s1567_s5 + $0x8] sm:$0xff]  ;;  %v159_v2 = vld [vmem:[%s1567_s5 + $0x18] sm:$0xff]  ;;  %v222_v29 = vstv %s1562_s30  ;;  %s1273_s21 = sld [smem:[#allocation2 + $0x8]]  ;;  %s1473_s25 = smov 124  }
  0x2c   : > { %v160_v3 = vld [vmem:[%s1567_s5 + $0x20] sm:$0xff]  ;;  %v162_v4 = vld [vmem:[%s1567_s5 + $0x30] sm:$0xff]  ;;  %v1579_v5 = vld [vmem:[%s1567_s5 + $0x38] sm:$0xff]  ;;  %v169_v6 = vsel %vm168_vm0, %v156_v0, -inf  ;;  %v170_v7 = vsel %vm168_vm0, %v159_v2, -inf  ;;  %v176_v8 = vsel %vm168_vm0, %v157_v1, -inf }
  0x2d   : > { %v1586_v10 = vld [vmem:[%s1567_s5 + $0x48] sm:$0xff]  ;;  %v1589_v11 = vld [vmem:[%s1567_s5 + $0x50] sm:$0xff]  ;;  %v171_v12 = vsel %vm168_vm0, %v162_v4, -inf  ;;  %v177_v13 = vsel %vm168_vm0, %v160_v3, -inf  ;;  %v178_v14 = vsel %vm168_vm0, %v1579_v5, -inf  ;;  %v191_v15 = vsel %vm168_vm0, %v156_v0, 0.0 }
  0x2e   : > { %v172_v16 = vmax.f32 %v169_v6, %v171_v12  ;;  %v173_v17 = vsel %vm168_vm0, %v1586_v10, -inf  ;;  %v179_v18 = vmax.f32 %v176_v8, %v178_v14  ;;  %v180_v19 = vsel %vm168_vm0, %v1589_v11, -inf  ;;  %v158_v20 = vld [vmem:[%s1567_s5 + $0x10] sm:$0xf]  ;;  %v161_v21 = vld [vmem:[%s1567_s5 + $0x28] sm:$0xf] }
  0x2f   : > { %v174_v22 = vmax.f32 %v170_v7, %v173_v17  ;;  %v181_v23 = vmax.f32 %v177_v13, %v180_v19  ;;  %v192_v24 = vsel %vm168_vm0, %v159_v2, 0.0  ;;  %v1604_v25 = vsel %vm168_vm0, %v162_v4, 0.0  ;;  %v1607_v26 = vld [vmem:[%s1567_s5 + $0x40] sm:$0xf]  ;;  %v1610_v27 = vld [vmem:[%s1567_s5 + $0x58] sm:$0xf] }
  0x30   : > { %v1612_v28 = vadd.f32 %v192_v24, %v191_v15  ;;  %v1616_v30 = vsel %vm168_vm0, %v157_v1, 0.0  ;;  %v1619_v31 = vsel %vm168_vm0, %v160_v3, 0.0  ;;  %v184_v34 = vsel %vm183_vm1, %v158_v20, -inf  ;;  %s1274_s22 = sld [smem:[#allocation2 + $0x9]] }
  0x31   : > { %v1621_v32 = vmax.f32 %v172_v16, %v174_v22  ;;  %v1623_v33 = vmax.f32 %v179_v18, %v181_v23  ;;  %v185_v35 = vsel %vm183_vm1, %v161_v21, -inf  ;;  %v186_v36 = vsel %vm183_vm1, %v1607_v26, -inf  ;;  %s1276_s24 = sld [smem:[#allocation2 + $0xb]] }
  0x32   : > { %v188_v37 = vsel %vm183_vm1, %v1610_v27, -inf  ;;  %v1634_v38 = vsel %vm183_vm1, %v158_v20, 0.0  ;;  %v187_v43 = vmax.f32 %v184_v34, %v186_v36  ;;  %v1643_v45 = vsel %vm183_vm1, %v161_v21, 0.0  ;;  %s1277_s26 = sld [smem:[#allocation2 + $0xc]] }
  0x33   : > { %v237_v39 = vmul.f32 %v236_v9, %v1621_v32  ;;  %v223_v40 = vmul.f32 %v222_v29, %v1621_v32  ;;  %v238_v41 = vmul.f32 %v236_v9, %v1623_v33  ;;  %v224_v42 = vmul.f32 %v222_v29, %v1623_v33  ;;  %s1278_s27 = sld [smem:[#allocation2 + $0xd]] }
  0x34   : > { %v189_v44 = vmax.f32 %v185_v35, %v188_v37  ;;  %v250_v46 = vstv %s1569_s6  ;;  %v296_v48 = vstv %s1574_s7  ;;  %v264_v51 = vstv %s1625_s8  ;;  %s1279_s28 = sld [smem:[#allocation2 + $0xe]] }
  0x35   : > { %241 = vrot.lane.b32.xlu1 %v237_v39, %s1470_s16  ;;  %227 = vrot.lane.b32.xlu0 %v223_v40, %s1471_s17  ;;  %v252_v49 = vmul.f32 %v250_v46, %v1623_v33  ;;  %v251_v50 = vmul.f32 %v250_v46, %v1621_v32  ;;  %v298_v52 = vmul.f32 %v296_v48, %v1623_v33  ;;  %v317_v55 = vstv %s1272_s14  ;;  %s1281_s29 = sld [smem:[#allocation2 + $0x10]] }
  0x36   : > { %v1646_v47 = vmax.f32 %v187_v43, %v189_v44  ;;  %v297_v54 = vmul.f32 %v296_v48, %v1621_v32  ;;  %v266_v56 = vmul.f32 %v264_v51, %v1623_v33  ;;  %v265_v57 = vmul.f32 %v264_v51, %v1621_v32  ;;  %s1282_s30 = sld [smem:[#allocation2 + $0x11]] }
  0x37   : > { %v319_v58 = vmul.f32 %v317_v55, %v1623_v33  ;;  %v318_v59 = vmul.f32 %v317_v55, %v1621_v32  ;;  %v338_v60 = vstv %s1273_s21  ;;  %v304_v61 = vrot.slane %v298_v52, 1  ;;  %s1283_s3 = sld [smem:[#allocation2 + $0x12]] }
  0x38   : > { %v299_v53 = vmul.f32 %v296_v48, %v1646_v47  ;;  %v303_v63 = vrot.slane %v297_v54, 1  ;;  %v320_v0 = vmul.f32 %v317_v55, %v1646_v47  ;;  %v340_v1 = vmul.f32 %v338_v60, %v1623_v33  ;;  %s1721_s4 = sld [smem:[#allocation2 + $0x13]] }
  0x39   : > { %243 = vrot.lane.b32.xlu1 %v238_v41, %s1470_s16  ;;  %229 = vrot.lane.b32.xlu0 %v224_v42, %s1471_s17  ;;  %v325_v2 = vrot.slane %v319_v58, 1  ;;  %v341_v3 = vmul.f32 %v338_v60, %v1646_v47  ;;  %v339_v4 = vmul.f32 %v338_v60, %v1621_v32  ;;  %v359_v6 = vstv %s1274_s22  ;;  %s1286_s5 = sld [smem:[#allocation2 + $0x15]] }
  0x3a   : > { %v306_v62 = vrot.slane %v299_v53, 1  ;;  %v305_v8 = vsel %vm285_vm2, %v303_v63, %v304_v61  ;;  %v327_v9 = vrot.slane %v320_v0, 1  ;;  %v324_v12 = vrot.slane %v318_v59, 1  ;;  %s1287_s6 = sld [smem:[#allocation2 + $0x16]] }
  0x3b   : > { %v361_v13 = vmul.f32 %v359_v6, %v1623_v33  ;;  %v362_v14 = vmul.f32 %v359_v6, %v1646_v47  ;;  %v360_v15 = vmul.f32 %v359_v6, %v1621_v32  ;;  %v346_v16 = vrot.slane %v340_v1, 1  ;;  %s1288_s7 = sld [smem:[#allocation2 + $0x17]] }
  0x3c   : > { %v307_v7 = vsel %vm285_vm2, %v304_v61, %v306_v62  ;;  %v348_v17 = vrot.slane %v341_v3, 1  ;;  %v345_v18 = vrot.slane %v339_v4, 1  ;;  %v328_v19 = vsel %vm285_vm2, %v325_v2, %v327_v9  ;;  %s1289_s8 = sld [smem:[#allocation2 + $0x18]] }
  0x3d   : > { %257 = vrot.lane.b32.xlu1 %v252_v49, %s1472_s23  ;;  %255 = vrot.lane.b32.xlu0 %v251_v50, %s1472_s23  ;;  %v326_v20 = vsel %vm285_vm2, %v324_v12, %v325_v2  ;;  %v398_v21 = vstv %s1276_s24  ;;  %v367_v22 = vrot.slane %v361_v13, 1  ;;  %v369_v23 = vrot.slane %v362_v14, 1  ;;  %s1291_s14 = sld [smem:[#allocation2 + $0x1a]] }
  0x3e   : > { %v366_v24 = vrot.slane %v360_v15, 1  ;;  %v349_v29 = vsel %vm285_vm2, %v346_v16, %v348_v17  ;;  %v347_v34 = vsel %vm285_vm2, %v345_v18, %v346_v16  ;;  %v400_v35 = vmul.f32 %v398_v21, %v1623_v33  ;;  %s1292_s21 = sld [smem:[#allocation2 + $0x1b]] }
  0x3f   : > { %v401_v36 = vmul.f32 %v398_v21, %v1646_v47  ;;  %v399_v37 = vmul.f32 %v398_v21, %v1621_v32  ;;  %v419_v39 = vstv %s1277_s26  ;;  %v370_v40 = vsel %vm285_vm2, %v367_v22, %v369_v23  ;;  %s1293_s22 = sld [smem:[#allocation2 + $0x1c]] }
  0x40   : > { %v368_v41 = vsel %vm285_vm2, %v366_v24, %v367_v22  ;;  %v421_v42 = vmul.f32 %v419_v39, %v1623_v33  ;;  %v422_v43 = vmul.f32 %v419_v39, %v1646_v47  ;;  %v440_v44 = vstv %s1278_s27  ;;  %s1296_s24 = sld [smem:[#allocation2 + $0x1f]] }
  0x41   : > { %271 = vrot.lane.b32.xlu1 %v266_v56, %s1473_s25  ;;  %269 = vrot.lane.b32.xlu0 %v265_v57, %s1473_s25  ;;  %v200_v46 = vadd.f32 %v1619_v31, %v1616_v30  ;;  %v406_v48 = vrot.slane %v400_v35, 2  ;;  %v408_v49 = vrot.slane %v401_v36, 2  ;;  %v405_v50 = vrot.slane %v399_v37, 2  ;;  %s1294_s26 = sld [smem:[#allocation2 + $0x1d]] }
  0x42   : > { %v420_v51 = vmul.f32 %v419_v39, %v1621_v32  ;;  %v442_v52 = vmul.f32 %v440_v44, %v1623_v33  ;;  %v443_v53 = vmul.f32 %v440_v44, %v1646_v47  ;;  %v427_v54 = vrot.slane %v421_v42, 2  ;;  %s1297_s27 = sld [smem:[#allocation2 + $0x20]] }
  0x43   : > { %v429_v55 = vrot.slane %v422_v43, 2  ;;  %v441_v56 = vmul.f32 %v440_v44, %v1621_v32  ;;  %v409_v30 = vsel %vm387_vm3, %v406_v48, %v408_v49  ;;  %v407_v31 = vsel %vm387_vm3, %v405_v50, %v406_v48 }
  0x44   : > { %v426_v57 = vrot.slane %v420_v51, 2  ;;  %v461_v58 = vstv %s1279_s28  ;;  %v448_v59 = vrot.slane %v442_v52, 2  ;;  %v450_v60 = vrot.slane %v443_v53, 2  ;;  %s1298_s28 = sld [smem:[#allocation2 + $0x21]] }
  0x45   : > { %310 = vrot.lane.b32.xlu1 %v307_v7, %s1471_s17  ;;  %308 = vrot.lane.b32.xlu0 %v305_v8, %s1471_s17  ;;  %v430_v61 = vsel %vm387_vm3, %v427_v54, %v429_v55  ;;  %v447_v62 = vrot.slane %v441_v56, 2  ;;  %v463_v63 = vmul.f32 %v461_v58, %v1623_v33  ;;  %v500_v0 = vstv %s1281_s29  ;;  %s1299_s29 = sld [smem:[#allocation2 + $0x22]] }
  0x46   : > { %v428_v1 = vsel %vm387_vm3, %v426_v57, %v427_v54  ;;  %v464_v2 = vmul.f32 %v461_v58, %v1646_v47  ;;  %v462_v3 = vmul.f32 %v461_v58, %v1621_v32  ;;  %v201_v4 = vsel %vm168_vm0, %v1579_v5, 0.0 }
  0x47   : > { %v451_v6 = vsel %vm387_vm3, %v448_v59, %v450_v60  ;;  %v502_v7 = vmul.f32 %v500_v0, %v1623_v33  ;;  %v503_v8 = vmul.f32 %v500_v0, %v1646_v47  ;;  %v202_v9 = vadd.f32 %v201_v4, %v200_v46 }
  0x48   : > { %v449_v12 = vsel %vm387_vm3, %v447_v62, %v448_v59  ;;  %v469_v13 = vrot.slane %v463_v63, 2  ;;  %v521_v14 = vstv %s1282_s30  ;;  %v203_v15 = vsel %vm168_vm0, %v1589_v11, 0.0  ;;  %s1301_s30 = sld [smem:[#allocation2 + $0x24]] }
  0x49   : > { %331 = vrot.lane.b32.xlu1 %v328_v19, %s1470_s16  ;;  %329 = vrot.lane.b32.xlu0 %v326_v20, %s1470_s16  ;;  %v471_v16 = vrot.slane %v464_v2, 2  ;;  %v468_v5 = vrot.slane %v462_v3, 2  ;;  %v501_v17 = vmul.f32 %v500_v0, %v1621_v32  ;;  %v1719_v18 = vadd.f32 %v203_v15, %v202_v9 }
  0x4a   : > { %v542_v19 = vstv %s1283_s3  ;;  %v195_v20 = vadd.f32 %v1604_v25, %v1612_v28  ;;  %v196_v21 = vsel %vm168_vm0, %v1586_v10, 0.0  ;;  %v508_v22 = vrot.slane %v502_v7, 3  ;;  %s1302_s3 = sld [smem:[#allocation2 + $0x25]] }
  0x4b   : > { %v510_v23 = vrot.slane %v503_v8, 3  ;;  %v523_v24 = vmul.f32 %v521_v14, %v1623_v33  ;;  %v524_v11 = vmul.f32 %v521_v14, %v1646_v47  ;;  %v208_v25 = vsel %vm183_vm1, %v1607_v26, 0.0 }
  0x4c   : > { %v210_v10 = vsel %vm183_vm1, %v1610_v27, 0.0  ;;  %v472_v28 = vsel %vm387_vm3, %v469_v13, %v471_v16  ;;  %v470_v35 = vsel %vm387_vm3, %v468_v5, %v469_v13  ;;  %v507_v36 = vrot.slane %v501_v17, 3 }
  0x4d   : > { %352 = vrot.lane.b32.xlu1 %v349_v29, %s1472_s23  ;;  %350 = vrot.lane.b32.xlu0 %v347_v34, %s1472_s23  ;;  %v1731_v29 = vadd.f32 %v196_v21, %v195_v20  ;;  %v207_v34 = vadd.f32 %v1643_v45, %v1634_v38  ;;  %v522_v37 = vmul.f32 %v521_v14, %v1621_v32  ;;  %v529_v26 = vrot.slane %v523_v24, 3 }
  0x4e   : > { %v545_v38 = vmul.f32 %v542_v19, %v1646_v47  ;;  %v531_v27 = vrot.slane %v524_v11, 3  ;;  %v543_v45 = vmul.f32 %v542_v19, %v1621_v32  ;;  %v509_v42 = vsel %vm489_vm4, %v507_v36, %v508_v22 }
  0x4f   : > { %v209_v39 = vadd.f32 %v208_v25, %v207_v34  ;;  %v528_v43 = vrot.slane %v522_v37, 3  ;;  %v563_v46 = vstv %s1721_s4  ;;  %v602_v52 = vstv %s1286_s5  ;;  %s1303_s4 = sld [smem:[#allocation2 + $0x26]] }
  0x50   : > { %v552_v49 = vrot.slane %v545_v38, 3  ;;  %v532_v50 = vsel %vm489_vm4, %v529_v26, %v531_v27  ;;  %v549_v51 = vrot.slane %v543_v45, 3  ;;  %v565_v54 = vmul.f32 %v563_v46, %v1623_v33  ;;  %s1304_s5 = sld [smem:[#allocation2 + $0x27]] }
  0x51   : > { %373 = vrot.lane.b32.xlu1 %v370_v40, %s1473_s25  ;;  %371 = vrot.lane.b32.xlu0 %v368_v41, %s1473_s25  ;;  %v544_v40 = vmul.f32 %v542_v19, %v1623_v33  ;;  %v511_v41 = vsel %vm489_vm4, %v508_v22, %v510_v23  ;;  %v1749_v44 = vadd.f32 %v210_v10, %v209_v39  ;;  %v623_v63 = vstv %s1287_s6  ;;  %s1306_s6 = sld [smem:[#allocation2 + $0x29]] }
  0x52   : > { %v530_v53 = vsel %vm489_vm4, %v528_v43, %v529_v26  ;;  %v566_v55 = vmul.f32 %v563_v46, %v1646_v47  ;;  %v564_v56 = vmul.f32 %v563_v46, %v1621_v32  ;;  %v605_v58 = vmul.f32 %v602_v52, %v1646_v47 }
  0x53   : > { %v550_v48 = vrot.slane %v544_v40, 3  ;;  %v603_v59 = vmul.f32 %v602_v52, %v1621_v32  ;;  %v571_v60 = vrot.slane %v565_v54, 3  ;;  %v625_v2 = vmul.f32 %v623_v63, %v1623_v33 }
  0x54   : > { %v570_v62 = vrot.slane %v564_v56, 3  ;;  %v626_v3 = vmul.f32 %v623_v63, %v1646_v47  ;;  %v644_v4 = vstv %s1288_s7  ;;  %v624_v9 = vmul.f32 %v623_v63, %v1621_v32  ;;  %s1307_s7 = sld [smem:[#allocation2 + $0x2a]] }
  0x55   : > { %412 = vrot.lane.b32.xlu1 %v409_v30, %s1471_s17  ;;  %410 = vrot.lane.b32.xlu0 %v407_v31, %s1471_s17  ;;  %v553_v30 = vsel %vm489_vm4, %v550_v48, %v552_v49  ;;  %v604_v31 = vmul.f32 %v602_v52, %v1623_v33  ;;  %v551_v57 = vsel %vm489_vm4, %v549_v51, %v550_v48  ;;  %v609_v8 = vrot.slane %v603_v59, 4 }
  0x56   : > { %v572_v7 = vsel %vm489_vm4, %v570_v62, %v571_v60  ;;  %v631_v13 = vrot.slane %v625_v2, 4  ;;  %v633_v14 = vrot.slane %v626_v3, 4  ;;  %v647_v15 = vmul.f32 %v644_v4, %v1646_v47 }
  0x57   : > { %v610_v0 = vrot.slane %v604_v31, 4  ;;  %v645_v16 = vmul.f32 %v644_v4, %v1621_v32  ;;  %v630_v19 = vrot.slane %v624_v9, 4  ;;  %v665_v20 = vstv %s1289_s8  ;;  %s1308_s8 = sld [smem:[#allocation2 + $0x2b]] }
  0x58   : > { %v634_v21 = vsel %vm591_vm5, %v631_v13, %v633_v14  ;;  %v654_v23 = vrot.slane %v647_v15, 4  ;;  %v667_v34 = vmul.f32 %v665_v20, %v1623_v33  ;;  %v668_v25 = vmul.f32 %v665_v20, %v1646_v47 }
  0x59   : > { %433 = vrot.lane.b32.xlu1 %v430_v61, %s1470_s16  ;;  %431 = vrot.lane.b32.xlu0 %v428_v1, %s1470_s16  ;;  %v573_v61 = vrot.slane %v566_v55, 3  ;;  %v612_v1 = vrot.slane %v605_v58, 4  ;;  %v611_v17 = vsel %vm591_vm5, %v609_v8, %v610_v0  ;;  %v651_v24 = vrot.slane %v645_v16, 4 }
  0x5a   : > { %v632_v11 = vsel %vm591_vm5, %v630_v19, %v631_v13  ;;  %v666_v10 = vmul.f32 %v665_v20, %v1621_v32  ;;  %v673_v36 = vrot.slane %v667_v34, 4  ;;  %v675_v37 = vrot.slane %v668_v25, 4 }
  0x5b   : > { %v613_v5 = vsel %vm591_vm5, %v610_v0, %v612_v1  ;;  %v1794_v40 = vmul.f32 0.25, %v1719_v18  ;;  %v1797_v38 = vmul.f32 0.25, %v1731_v29  ;;  %v692_v45 = vstv %s1291_s14  ;;  %s1309_s14 = sld [smem:[#allocation2 + $0x2c]] }
  0x5c   : > { %v672_v39 = vrot.slane %v666_v10, 4  ;;  %v676_v26 = vsel %vm591_vm5, %v673_v36, %v675_v37  ;;  %v706_v18 = vstv %s1292_s21  ;;  %v720_v46 = vstv %s1293_s22  ;;  %s1883_s21 = sld [smem:[#allocation2]] }
  0x5d   : > { %454 = vrot.lane.b32.xlu1 %v451_v6, %s1472_s23  ;;  %452 = vrot.lane.b32.xlu0 %v449_v12, %s1472_s23  ;;  %v574_v6 = vsel %vm489_vm4, %v571_v60, %v573_v61  ;;  %v646_v12 = vmul.f32 %v644_v4, %v1623_v33  ;;  %v708_v29 = vmul.f32 %v706_v18, %v1794_v40  ;;  %v1810_v48 = vmul.f32 0.25, %v1749_v44  ;;  %s1311_s22 = sld [smem:[#allocation2 + $0x2e]] }
  0x5e   : > { %v674_v27 = vsel %vm591_vm5, %v672_v39, %v673_v36  ;;  %v707_v43 = vmul.f32 %v706_v18, %v1797_v38  ;;  %v765_v49 = vstv %s1296_s24  ;;  %v721_v51 = vmul.f32 %v720_v46, %v1797_v38  ;;  %s1903_s24 = sld [smem:[#allocation2 + $0x2f]] }
  0x5f   : > { %v652_v22 = vrot.slane %v646_v12, 4  ;;  %v734_v52 = vstv %s1294_s26  ;;  %v768_v54 = vmul.f32 %v765_v49, %v1810_v48  ;;  %v766_v55 = vmul.f32 %v765_v49, %v1797_v38  ;;  %s1905_s26 = sld [smem:[#allocation2 + $0x5]] }
  0x60   : > { %v786_v56 = vstv %s1297_s27  ;;  %v736_v44 = vmul.f32 %v734_v52, %v1794_v40  ;;  %v807_v58 = vstv %s1298_s28  ;;  %v828_v63 = vstv %s1299_s29  ;;  %s1919_s27 = sld [smem:[#allocation2 + $0x30]] }
  0x61   : > { %475 = vrot.lane.b32.xlu1 %v472_v28, %s1473_s25  ;;  %473 = vrot.lane.b32.xlu0 %v470_v35, %s1473_s25  ;;  %v655_v28 = vsel %vm591_vm5, %v652_v22, %v654_v23  ;;  %v653_v35 = vsel %vm591_vm5, %v651_v24, %v652_v22  ;;  %v788_v31 = vmul.f32 %v786_v56, %v1794_v40  ;;  %v775_v60 = vrot.slane %v768_v54, 1  ;;  %s1928_s28 = sld [smem:[#allocation2 + $0x31]] }
  0x62   : > { %v772_v61 = vrot.slane %v766_v55, 1  ;;  %v789_v62 = vmul.f32 %v786_v56, %v1810_v48  ;;  %v809_v2 = vmul.f32 %v807_v58, %v1794_v40  ;;  %v808_v3 = vmul.f32 %v807_v58, %v1797_v38  ;;  %s1964_s29 = sld [smem:[#allocation2 + $0xa]] }
  0x63   : > { %v794_v0 = vrot.slane %v788_v31, 1  ;;  %v810_v8 = vmul.f32 %v807_v58, %v1810_v48  ;;  %v866_v9 = vstv %s1301_s30  ;;  %v830_v13 = vmul.f32 %v828_v63, %v1794_v40  ;;  %s1300_s30 = sld [smem:[#allocation2 + $0x23]] }
  0x64   : > { %v815_v12 = vrot.slane %v809_v2, 1  ;;  %v831_v14 = vmul.f32 %v828_v63, %v1810_v48  ;;  %v829_v15 = vmul.f32 %v828_v63, %v1797_v38  ;;  %v814_v19 = vrot.slane %v808_v3, 1 }
  0x65   : > { %514 = vrot.lane.b32.xlu1 %v511_v41, %s1471_s17  ;;  %512 = vrot.lane.b32.xlu0 %v509_v42, %s1471_s17  ;;  %v694_v41 = vmul.f32 %v692_v45, %v1794_v40  ;;  %v693_v42 = vmul.f32 %v692_v45, %v1797_v38  ;;  %v868_v20 = vmul.f32 %v866_v9, %v1794_v40  ;;  %v836_v22 = vrot.slane %v830_v13, 1 }
  0x66   : > { %v838_v23 = vrot.slane %v831_v14, 1  ;;  %v835_v24 = vrot.slane %v829_v15, 1  ;;  %v816_v25 = vsel %vm285_vm2, %v814_v19, %v815_v12  ;;  %v887_v10 = vstv %s1302_s3  ;;  %s1305_s3 = sld [smem:[#allocation2 + $0x28]] }
  0x67   : > { %v888_v45 = vmul.f32 %v887_v10, %v1797_v38  ;;  %v967_v58 = vstv %s1306_s6  ;;  %v988_v2 = vstv %s1307_s7  ;;  %v1009_v19 = vstv %s1308_s8  ;;  %s1322_s7 = sshll.u32 %s1513_s13, 8 }
  0x68   : > { %v839_v36 = vsel %vm285_vm2, %v836_v22, %v838_v23  ;;  %v837_v37 = vsel %vm285_vm2, %v835_v24, %v836_v22  ;;  %v1011_v24 = vmul.f32 %v1009_v19, %v1794_v40 }
  0x69   : > { %535 = vrot.lane.b32.xlu1 %v532_v50, %s1470_s16  ;;  %533 = vrot.lane.b32.xlu0 %v530_v53, %s1470_s16  ;;  %v722_v50 = vmul.f32 %v720_v46, %v1794_v40  ;;  %v767_v53 = vmul.f32 %v765_v49, %v1794_v40  ;;  %v929_v46 = vstv %s1304_s5  ;;  %s148_s5 = sand.u32 1, %s1459_s10  }
  0x6a   : > { %v932_v54 = vmul.f32 %v929_v46, %v1810_v48  ;;  %s1264_s6 = sshll.u32 %s148_s5, 4  ;;  %s2047_s13 = scalar_lea.sflag [#allocation3], %s148_s5 }
  0x6b   : > { %v773_v59 = vrot.slane %v767_v53, 1  ;;  %v931_v53 = vmul.f32 %v929_v46, %v1794_v40  ;;  %s150_s8 = scalar_lea.vmem [#allocation5], %s1264_s6 }
  0x6d   : > { %556 = vrot.lane.b32.xlu1 %v553_v30, %s1472_s23  ;;  %554 = vrot.lane.b32.xlu0 %v551_v57, %s1472_s23  ;;  %v735_v30 = vmul.f32 %v734_v52, %v1797_v38  ;;  %v787_v57 = vmul.f32 %v786_v56, %v1797_v38  ;;  %v776_v4 = vsel %vm285_vm2, %v773_v59, %v775_v60 }
  0x6f   : > { %v793_v1 = vrot.slane %v787_v57, 1 }
  0x71   : > { %577 = vrot.lane.b32.xlu1 %v574_v6, %s1473_s25  ;;  %575 = vrot.lane.b32.xlu0 %v572_v7, %s1473_s25  ;;  %v774_v6 = vsel %vm285_vm2, %v772_v61, %v773_v59  ;;  %v796_v7 = vrot.slane %v789_v62, 1  ;;  %v937_v61 = vrot.slane %v931_v53, 2  ;;  %v939_v62 = vrot.slane %v932_v54, 2 }
  0x73   : > { %v797_v16 = vsel %vm285_vm2, %v794_v0, %v796_v7 }
  0x75   : > { %616 = vrot.lane.b32.xlu1 %v613_v5, %s1471_s17  ;;  %614 = vrot.lane.b32.xlu0 %v611_v17, %s1471_s17  ;;  %v795_v5 = vsel %vm285_vm2, %v793_v1, %v794_v0  ;;  %v817_v17 = vrot.slane %v810_v8, 1  ;;  %v969_v0 = vmul.f32 %v967_v58, %v1794_v40  ;;  %v970_v1 = vmul.f32 %v967_v58, %v1810_v48 }
  0x77   : > { %v818_v34 = vsel %vm285_vm2, %v815_v12, %v817_v17  ;;  %v940_v12 = vsel %vm387_vm3, %v937_v61, %v939_v62  ;;  %v975_v14 = vrot.slane %v969_v0, 3  ;;  %v977_v15 = vrot.slane %v970_v1, 3 }
  0x78   : > { %v989_v17 = vmul.f32 %v988_v2, %v1797_v38 }
  0x79   : > { %637 = vrot.lane.b32.xlu1 %v634_v21, %s1470_s16  ;;  %635 = vrot.lane.b32.xlu0 %v632_v11, %s1470_s16  ;;  %v869_v21 = vmul.f32 %v866_v9, %v1810_v48  ;;  %v867_v11 = vmul.f32 %v866_v9, %v1797_v38  ;;  %v990_v9 = vmul.f32 %v988_v2, %v1794_v40 }
  0x7a   : > { %v978_v23 = vsel %vm489_vm4, %v975_v14, %v977_v15 }
  0x7b   : > { %v873_v39 = vrot.slane %v867_v11, 2  ;;  %v996_v22 = vrot.slane %v990_v9, 3  ;;  %v1012_v11 = vmul.f32 %v1009_v19, %v1810_v48 }
  0x7d   : > { %658 = vrot.lane.b32.xlu1 %v655_v28, %s1472_s23  ;;  %656 = vrot.lane.b32.xlu0 %v653_v35, %s1472_s23  ;;  %v874_v28 = vrot.slane %v868_v20, 2  ;;  %v876_v35 = vrot.slane %v869_v21, 2 }
  0x7f   : > { %v875_v18 = vsel %vm387_vm3, %v873_v39, %v874_v28 }
  0x81   : > { %679 = vrot.lane.b32.xlu1 %v676_v26, %s1473_s25  ;;  %677 = vrot.lane.b32.xlu0 %v674_v27, %s1473_s25  ;;  %v889_v26 = vmul.f32 %v887_v10, %v1794_v40  ;;  %v890_v27 = vmul.f32 %v887_v10, %v1810_v48 }
  0x83   : > { %v895_v49 = vrot.slane %v889_v26, 2 }
  0x85   : > { %699 = vrot.lane.b32.xlu1 %v694_v41, %s1471_s17  ;;  %697 = vrot.lane.b32.xlu0 %v693_v42, %s1471_s17  ;;  %v908_v41 = vstv %s1303_s4  ;;  %v877_v42 = vsel %vm387_vm3, %v874_v28, %v876_v35  ;;  %v995_v28 = vrot.slane %v989_v17, 3  ;;  %v1010_v35 = vmul.f32 %v1009_v19, %v1797_v38  ;;  %s1310_s4 = sld [smem:[#allocation2 + $0x2d]] }
  0x86   : > { %v909_v52 = vmul.f32 %v908_v41, %v1797_v38 }
  0x88   : > { %v915_v57 = vrot.slane %v909_v52, 2 }
  0x89   : > { %713 = vrot.lane.b32.xlu1 %v708_v29, %s1470_s16  ;;  %711 = vrot.lane.b32.xlu0 %v707_v43, %s1470_s16  ;;  %v910_v29 = vmul.f32 %v908_v41, %v1794_v40  ;;  %v911_v43 = vmul.f32 %v908_v41, %v1810_v48  ;;  %v1019_v41 = vrot.slane %v1012_v11, 3 }
  0x8b   : > { %v916_v55 = vrot.slane %v910_v29, 2  ;;  %v918_v56 = vrot.slane %v911_v43, 2  ;;  %v997_v29 = vsel %vm489_vm4, %v995_v28, %v996_v22  ;;  %v1016_v43 = vrot.slane %v1010_v35, 3 }
  0x8d   : > { %727 = vrot.lane.b32.xlu1 %v722_v50, %s1472_s23  ;;  %725 = vrot.lane.b32.xlu0 %v721_v51, %s1472_s23  ;;  %v897_v50 = vrot.slane %v890_v27, 2  ;;  %v894_v51 = vrot.slane %v888_v45, 2  ;;  %v919_v3 = vsel %vm387_vm3, %v916_v55, %v918_v56  ;;  %v216_v27 = vstv %s1883_s21 }
  0x8e   : > { %v1017_v45 = vrot.slane %v1011_v24, 3  ;;  %v217_v56 = vmul.f32 %v216_v27, %v1621_v32  ;;  %v1131_v24 = vstv %s1928_s28 }
  0x8f   : > { %v896_v31 = vsel %vm387_vm3, %v894_v51, %v895_v49 }
  0x91   : > { %741 = vrot.lane.b32.xlu1 %v736_v44, %s1473_s25  ;;  %739 = vrot.lane.b32.xlu0 %v735_v30, %s1473_s25  ;;  %v930_v44 = vmul.f32 %v929_v46, %v1797_v38  ;;  %v898_v30 = vsel %vm387_vm3, %v895_v49, %v897_v50  ;;  %v218_v49 = vmul.f32 %v216_v27, %v1623_v33 }
  0x93   : > { %v936_v63 = vrot.slane %v930_v44, 2  ;;  %v1020_v44 = vsel %vm489_vm4, %v1017_v45, %v1019_v41 }
  0x95   : > { %779 = vrot.lane.b32.xlu1 %v776_v4, %s1471_s17  ;;  %777 = vrot.lane.b32.xlu0 %v774_v6, %s1471_s17  ;;  %v917_v4 = vsel %vm387_vm3, %v915_v57, %v916_v55  ;;  %v968_v6 = vmul.f32 %v967_v58, %v1797_v38  ;;  %v938_v13 = vsel %vm387_vm3, %v936_v63, %v937_v61  ;;  %v1089_v58 = vstv %s1903_s24  ;;  %s2043_s24 = scalar_lea.hbm %s2089_s2, %s1322_s7 }
  0x96   : > { %v278_v61 = vstv %s1905_s26  ;;  %v1090_v9 = vmul.f32 %v1089_v58, %v1797_v38 }
  0x97   : > { %v280_v15 = vmul.f32 %v278_v61, %v1623_v33 }
  0x99   : > { %800 = vrot.lane.b32.xlu1 %v797_v16, %s1470_s16  ;;  %798 = vrot.lane.b32.xlu0 %v795_v5, %s1470_s16  ;;  %v974_v16 = vrot.slane %v968_v6, 3  ;;  %v991_v5 = vmul.f32 %v988_v2, %v1810_v48  ;;  %v1092_v6 = vmul.f32 %v1089_v58, %v1810_v48 }
  0x9b   : > { %v998_v10 = vrot.slane %v991_v5, 3  ;;  %v279_v5 = vmul.f32 %v278_v61, %v1621_v32  ;;  %v1099_v11 = vrot.slane %v1092_v6, 4 }
  0x9d   : > { %821 = vrot.lane.b32.xlu1 %v818_v34, %s1472_s23  ;;  %819 = vrot.lane.b32.xlu0 %v816_v25, %s1472_s23  ;;  %v1030_v34 = vstv %s1309_s14  ;;  %v976_v25 = vsel %vm489_vm4, %v974_v16, %v975_v14  ;;  %v1110_v14 = vstv %s1919_s27  ;;  %v281_v16 = vmul.f32 %v278_v61, %v1646_v47  ;;  %s1184_s14 = sshll.u32 %s150_s8, 4  ;;  %s1474_s27 = smov [#allocation5]   ;;  %s2045_s14 = int_to_ptr.vmem [resolvable:$true] %s1184_s14 }
  0x9e   : > { %v1032_v39 = vmul.f32 %v1030_v34, %v1794_v40  ;;  %v1033_v26 = vmul.f32 %v1030_v34, %v1810_v48  ;;  %v1031_v46 = vmul.f32 %v1030_v34, %v1797_v38  ;;  %v1096_v34 = vrot.slane %v1090_v9, 4  ;;  %s1403_s26 = scalar_lea.vmem %s2045_s14, 256  ;;  %s1407_s28 = sshll.u32 %s1474_s27, 4  ;;  %s1408_s28 = int_to_ptr.vmem [resolvable:$false] %s1407_s28 }
  0x9f   : > { %v1111_v35 = vmul.f32 %v1110_v14, %v1797_v38  ;;  %v286_v27 = vrot.slane %v279_v5, 1  ;;  %p1404_p9 = scmp.ne.s32.totalorder %s2045_s14, %s1403_s26  ;;  %p1410_p13 = scmp.lt.s32.totalorder %s2045_s14, %s1408_s28 }
  0xa0   : > { %v1038_v52 = vrot.slane %v1032_v39, 3  ;;  %v1040_v53 = vrot.slane %v1033_v26, 3  ;;  %v287_v39 = vrot.slane %v280_v15, 1  ;;  %v289_v26 = vrot.slane %v281_v16, 1 }
  0xa1   : > { %842 = vrot.lane.b32.xlu1 %v839_v36, %s1473_s25  ;;  %840 = vrot.lane.b32.xlu0 %v837_v37, %s1473_s25  ;;  %p1405_p10 = pnand %p1404_p9, %p1530_p5 }
  0xa2   : > { %v1041_v1 = vsel %vm489_vm4, %v1038_v52, %v1040_v53 }
  0xa3   : > { %p1406_p12 = pneg %p1405_p10 }
  0xa5   : > { %880 = vrot.lane.b32.xlu1 %v877_v42, %s1471_s17  ;;  %878 = vrot.lane.b32.xlu0 %v875_v18, %s1471_s17  ;;  %v1068_v42 = vstv %s1311_s22  ;;  %v999_v18 = vsel %vm489_vm4, %v996_v22, %v998_v10 }
  0xa6   : > { %v1070_v54 = vmul.f32 %v1068_v42, %v1794_v40  ;;  %v1071_v55 = vmul.f32 %v1068_v42, %v1810_v48  ;;  %v1069_v57 = vmul.f32 %v1068_v42, %v1797_v38 }
  0xa7   : > { %v1868_v59 = vpop.permute.xlu1 %241  ;;  %v1870_v60 = vpop.permute.xlu0 %227 }
  0xa8   : > { %v1076_v2 = vrot.slane %v1070_v54, 4  ;;  %v1117_v54 = vrot.slane %v1111_v35, 4 }
  0xa9   : > { %901 = vrot.lane.b32.xlu1 %v898_v30, %s1470_s16  ;;  %899 = vrot.lane.b32.xlu0 %v896_v31, %s1470_s16  ;;  %v1018_v30 = vsel %vm489_vm4, %v1016_v43, %v1017_v45  ;;  %v1037_v31 = vrot.slane %v1031_v46, 3 }
  0xab   : > { %v1879_v7 = vpop.permute.xlu1 %243  ;;  %v1881_v8 = vpop.permute.xlu0 %229 }
  0xac   : > { %v234_v0 = vadd.f32 %v1881_v8, %v218_v49  ;;  %v1075_v8 = vrot.slane %v1069_v57, 4 }
  0xad   : > { %922 = vrot.lane.b32.xlu1 %v919_v3, %s1472_s23  ;;  %920 = vrot.lane.b32.xlu0 %v917_v4, %s1472_s23  ;;  %v1078_v3 = vrot.slane %v1071_v55, 4  ;;  %v1091_v4 = vmul.f32 %v1089_v58, %v1794_v40  ;;  %v290_v55 = vsel %vm285_vm2, %v287_v39, %v289_v26 }
  0xae   : > { %v248_v22 = vadd.f32 %v1879_v7, %v234_v0  ;;  %v1077_v28 = vsel %vm591_vm5, %v1075_v8, %v1076_v2  ;;  %v1113_v7 = vmul.f32 %v1110_v14, %v1810_v48 }
  0xaf   : > { %v1892_v20 = vpop.permute.xlu1 %257  ;;  %v1894_v21 = vpop.permute.xlu0 %255 }
  0xb0   : > { %v262_v42 = vadd.f32 %v1892_v20, %v248_v22  ;;  %v1120_v53 = vrot.slane %v1113_v7, 4 }
  0xb1   : > { %943 = vrot.lane.b32.xlu1 %v940_v12, %s1473_s25  ;;  %941 = vrot.lane.b32.xlu0 %v938_v13, %s1473_s25  ;;  %v233_v12 = vadd.f32 %v1870_v60, %v217_v56  ;;  %v1039_v13 = vsel %vm489_vm4, %v1037_v31, %v1038_v52  ;;  %v1097_v60 = vrot.slane %v1091_v4, 4  ;;  %v1132_v52 = vmul.f32 %v1131_v24, %v1797_v38 }
  0xb2   : > { %v288_v56 = vsel %vm285_vm2, %v286_v27, %v287_v39  ;;  %v380_v31 = vstv %s1964_s29  ;;  %s1409_s29 = scalar_lea.vmem %s1408_s28, 512 }
  0xb3   : > { %v1907_v36 = vpop.permute.xlu1 %271  ;;  %v1909_v37 = vpop.permute.xlu0 %269  ;;  %v247_v10 = vadd.f32 %v1868_v59, %v233_v12  ;;  %v1134_v59 = vmul.f32 %v1131_v24, %v1810_v48  ;;  %v1100_v43 = vsel %vm591_vm5, %v1097_v60, %v1099_v11  ;;  %v1098_v46 = vsel %vm591_vm5, %v1096_v34, %v1097_v60  ;;  %p1411_p0 = scmp.lt.s32.totalorder %s1409_s29, %s1403_s26 }
  0xb4   : > { %v276_v20 = vadd.f32 %v1907_v36, %v262_v42  ;;  %v1138_v61 = vrot.slane %v1132_v52, 4  ;;  %v382_v4 = vmul.f32 %v380_v31, %v1623_v33  ;;  %v383_v6 = vmul.f32 %v380_v31, %v1646_v47 }
  0xb5   : > { %981 = vrot.lane.b32.xlu1 %v978_v23, %s1471_s17  ;;  %979 = vrot.lane.b32.xlu0 %v976_v25, %s1471_s17  ;;  %v1079_v23 = vsel %vm591_vm5, %v1076_v2, %v1078_v3  ;;  %v1112_v25 = vmul.f32 %v1110_v14, %v1794_v40  ;;  %v1141_v58 = vrot.slane %v1134_v59, 4  ;;  %v381_v9 = vmul.f32 %v380_v31, %v1621_v32  ;;  %p1412_p1 = por %p1411_p0, %p1410_p13 }
  0xb6   : > { %v294_v0 = vadd.f32 %v290_v55, %v276_v20 }
  0xb7   : > { %v1922_v50 = vpop.permute.xlu1 %310  ;;  %v1924_v51 = vpop.permute.xlu0 %308  ;;  %v1118_v49 = vrot.slane %v1112_v25, 4  ;;  %v388_v60 = vrot.slane %v381_v9, 2  ;;  %p1413_p2 = pnand %p1412_p1, %p1406_p12 }
  0xb8   : > { %v315_v12 = vadd.f32 %v1922_v50, %v294_v0 }
  0xb9   : > { %1002 = vrot.lane.b32.xlu1 %v999_v18, %s1470_s16  ;;  %1000 = vrot.lane.b32.xlu0 %v997_v29, %s1470_s16  ;;  %v261_v18 = vadd.f32 %v1894_v21, %v247_v10  ;;  %v1133_v29 = vmul.f32 %v1131_v24, %v1794_v40  ;;  %v391_v24 = vrot.slane %v383_v6, 2 }
  0xbb   : > { %v1938_v62 = vpop.permute.xlu1 %331  ;;  %v1940_v63 = vpop.permute.xlu0 %329  ;;  %v275_v21 = vadd.f32 %v1909_v37, %v261_v18  ;;  %v1139_v57 = vrot.slane %v1133_v29, 4  ;;  %v1121_v37 = vsel %vm591_vm5, %v1118_v49, %v1120_v53 }
  0xbc   : > { %v336_v5 = vadd.f32 %v1938_v62, %v315_v12 }
  0xbd   : > { %1023 = vrot.lane.b32.xlu1 %v1020_v44, %s1472_s23  ;;  %1021 = vrot.lane.b32.xlu0 %v1018_v30, %s1472_s23  ;;  %v293_v36 = vadd.f32 %v288_v56, %v275_v21  ;;  %v1142_v8 = vsel %vm591_vm5, %v1139_v57, %v1141_v58  ;;  %v1140_v14 = vsel %vm591_vm5, %v1138_v61, %v1139_v57 }
  0xbf   : > { %v1955_v17 = vpop.permute.xlu1 %352  ;;  %v1957_v19 = vpop.permute.xlu0 %350 }
  0xc0   : > { %v357_v50 = vadd.f32 %v1955_v17, %v336_v5 }
  0xc1   : > { %1044 = vrot.lane.b32.xlu1 %v1041_v1, %s1473_s25  ;;  %1042 = vrot.lane.b32.xlu0 %v1039_v13, %s1473_s25  ;;  %v1119_v1 = vsel %vm591_vm5, %v1117_v54, %v1118_v49  ;;  %v314_v13 = vadd.f32 %v1924_v51, %v293_v36 }
  0xc3   : > { %v374_v45 = vpop.permute.xlu1 %373  ;;  %v372_v41 = vpop.permute.xlu0 %371  ;;  %v335_v22 = vadd.f32 %v1940_v63, %v314_v13 }
  0xc4   : > { %v378_v25 = vadd.f32 %v374_v45, %v357_v50 }
  0xc5   : > { %1082 = vrot.lane.b32.xlu1 %v1079_v23, %s1471_s17  ;;  %1080 = vrot.lane.b32.xlu0 %v1077_v28, %s1471_s17  ;;  %v389_v23 = vrot.slane %v382_v4, 2  ;;  %v356_v51 = vadd.f32 %v1957_v19, %v335_v22  ;;  %s1285_s17 = sld [smem:[#allocation2 + $0x14]] }
  0xc7   : > { %v413_v44 = vpop.permute.xlu1 %412  ;;  %v411_v30 = vpop.permute.xlu0 %410  ;;  %v377_v10 = vadd.f32 %v372_v41, %v356_v51  ;;  %v392_v62 = vsel %vm387_vm3, %v389_v23, %v391_v24  ;;  %v390_v63 = vsel %vm387_vm3, %v388_v60, %v389_v23 }
  0xc8   : > { %v396_v35 = vadd.f32 %v392_v62, %v378_v25 }
  0xc9   : > { %1103 = vrot.lane.b32.xlu1 %v1100_v43, %s1470_s16  ;;  %1101 = vrot.lane.b32.xlu0 %v1098_v46, %s1470_s16  ;;  %s1280_s16 = sld [smem:[#allocation2 + $0xf]]  ;;  %v395_v39 = vadd.f32 %v390_v63, %v377_v10 }
  0xca   : > { %v417_v29 = vadd.f32 %v413_v44, %v396_v35 }
  0xcb   : > { %v434_v2 = vpop.permute.xlu1 %433  ;;  %v432_v3 = vpop.permute.xlu0 %431  ;;  %v416_v45 = vadd.f32 %v411_v30, %v395_v39  ;;  %v584_v61 = vstv %s1285_s17 }
  0xcc   : > { %v438_v41 = vadd.f32 %v434_v2, %v417_v29  ;;  %v585_v2 = vmul.f32 %v584_v61, %v1621_v32 }
  0xcd   : > { %1124 = vrot.lane.b32.xlu1 %v1121_v37, %s1472_s23  ;;  %1122 = vrot.lane.b32.xlu0 %v1119_v1, %s1472_s23  ;;  %v437_v59 = vadd.f32 %v432_v3, %v416_v45  ;;  %v586_v37 = vmul.f32 %v584_v61, %v1623_v33  ;;  %v587_v1 = vmul.f32 %v584_v61, %v1646_v47  ;;  %s1290_s23 = sld [smem:[#allocation2 + $0x19]] }
  0xcf   : > { %v455_v15 = vpop.permute.xlu1 %454  ;;  %v453_v16 = vpop.permute.xlu0 %452  ;;  %v482_v26 = vstv %s1280_s16 }
  0xd0   : > { %v484_v27 = vmul.f32 %v482_v26, %v1623_v33  ;;  %v485_v42 = vmul.f32 %v482_v26, %v1646_v47  ;;  %v483_v17 = vmul.f32 %v482_v26, %v1621_v32  ;;  %v459_v21 = vadd.f32 %v455_v15, %v438_v41 }
  0xd1   : > { %1145 = vrot.lane.b32.xlu1 %v1142_v8, %s1473_s25  ;;  %1143 = vrot.lane.b32.xlu0 %v1140_v14, %s1473_s25  ;;  %v458_v53 = vadd.f32 %v453_v16, %v437_v59  ;;  %v593_v8 = vrot.slane %v586_v37, 4  ;;  %v595_v14 = vrot.slane %v587_v1, 4  ;;  %v592_v15 = vrot.slane %v585_v2, 4  ;;  %s1295_s25 = sld [smem:[#allocation2 + $0x1e]] }
  0xd2   : > { %v491_v43 = vrot.slane %v484_v27, 3  ;;  %v493_v46 = vrot.slane %v485_v42, 3  ;;  %v490_v49 = vrot.slane %v483_v17, 3 }
  0xd3   : > { %v476_v11 = vpop.permute.xlu1 %475  ;;  %v474_v34 = vpop.permute.xlu0 %473  ;;  %v596_v33 = vsel %vm591_vm5, %v593_v8, %v595_v14  ;;  %v594_v47 = vsel %vm591_vm5, %v592_v15, %v593_v8  ;;  %v849_v8 = vstv %s1300_s30 }
  0xd4   : > { %v480_v54 = vadd.f32 %v476_v11, %v459_v21  ;;  %v479_v55 = vadd.f32 %v474_v34, %v458_v53  ;;  %v494_v56 = vsel %vm489_vm4, %v491_v43, %v493_v46  ;;  %v492_v31 = vsel %vm489_vm4, %v490_v49, %v491_v43 }
  0xd6   : > { %v498_v44 = vadd.f32 %v494_v56, %v480_v54  ;;  %v497_v30 = vadd.f32 %v492_v31, %v479_v55 }
  0xd7   : > { %v515_v28 = vpop.permute.xlu1 %514  ;;  %v513_v7 = vpop.permute.xlu0 %512  ;;  %v748_v43 = vstv %s1295_s25 }
  0xd8   : > { %v519_v3 = vadd.f32 %v515_v28, %v498_v44  ;;  %v518_v4 = vadd.f32 %v513_v7, %v497_v30  ;;  %v686_v7 = vstv %s1290_s23  ;;  %v749_v21 = vmul.f32 %v748_v43, %v1797_v38 }
  0xda   : > { %v755_v30 = vrot.slane %v749_v21, 1 }
  0xdb   : > { %v536_v19 = vpop.permute.xlu1 %535  ;;  %v534_v18 = vpop.permute.xlu0 %533 }
  0xdc   : > { %v540_v12 = vadd.f32 %v536_v19, %v519_v3  ;;  %v539_v13 = vadd.f32 %v534_v18, %v518_v4  ;;  %v688_v19 = vmul.f32 %v686_v7, %v1794_v40  ;;  %v687_v18 = vmul.f32 %v686_v7, %v1797_v38 }
  0xdf   : > { %v557_v52 = vpop.permute.xlu1 %556  ;;  %v555_v20 = vpop.permute.xlu0 %554 }
  0xe0   : > { %v561_v16 = vadd.f32 %v557_v52, %v540_v12  ;;  %v560_v5 = vadd.f32 %v555_v20, %v539_v13  ;;  %v750_v52 = vmul.f32 %v748_v43, %v1794_v40  ;;  %v751_v20 = vmul.f32 %v748_v43, %v1810_v48 }
  0xe2   : > { %v758_v44 = vrot.slane %v751_v20, 1 }
  0xe3   : > { %v578_v57 = vpop.permute.xlu1 %577  ;;  %v576_v58 = vpop.permute.xlu0 %575 }
  0xe4   : > { %v582_v24 = vadd.f32 %v578_v57, %v561_v16  ;;  %v581_v60 = vadd.f32 %v576_v58, %v560_v5  ;;  %v756_v58 = vrot.slane %v750_v52, 1  ;;  %v851_v16 = vmul.f32 %v849_v8, %v1794_v40 }
  0xe5   : > { %v852_v5 = vmul.f32 %v849_v8, %v1810_v48 }
  0xe6   : > { %v600_v51 = vadd.f32 %v596_v33, %v582_v24  ;;  %v599_v11 = vadd.f32 %v594_v47, %v581_v60  ;;  %v759_v3 = vsel %vm285_vm2, %v756_v58, %v758_v44  ;;  %v757_v4 = vsel %vm285_vm2, %v755_v30, %v756_v58 }
  0xe7   : > { %v617_v0 = vpop.permute.xlu1 %616  ;;  %v615_v36 = vpop.permute.xlu0 %614  ;;  %v857_v47 = vrot.slane %v851_v16, 2 }
  0xe8   : > { %v621_v10 = vadd.f32 %v617_v0, %v600_v51  ;;  %v620_v62 = vadd.f32 %v615_v36, %v599_v11 }
  0xeb   : > { %v638_v6 = vpop.permute.xlu1 %637  ;;  %v636_v9 = vpop.permute.xlu0 %635 }
  0xec   : > { %v642_v63 = vadd.f32 %v638_v6, %v621_v10  ;;  %v641_v28 = vadd.f32 %v636_v9, %v620_v62 }
  0xef   : > { %v659_v22 = vpop.permute.xlu1 %658  ;;  %v657_v23 = vpop.permute.xlu0 %656 }
  0xf0   : > { %v663_v26 = vadd.f32 %v659_v22, %v642_v63  ;;  %v662_v27 = vadd.f32 %v657_v23, %v641_v28  ;;  %v850_v22 = vmul.f32 %v849_v8, %v1797_v38 }
  0xf2   : > { %v856_v51 = vrot.slane %v850_v22, 2 }
  0xf3   : > { %v680_v32 = vpop.permute.xlu1 %679  ;;  %v678_v50 = vpop.permute.xlu0 %677 }
  0xf4   : > { %v684_v42 = vadd.f32 %v680_v32, %v663_v26  ;;  %v683_v17 = vadd.f32 %v678_v50, %v662_v27  ;;  %v859_v32 = vrot.slane %v852_v5, 2  ;;  %v858_v28 = vsel %vm387_vm3, %v856_v51, %v857_v47 }
  0xf5   : > { %v950_v27 = vstv %s1305_s3 }
  0xf6   : > { %v690_v41 = vadd.f32 %v688_v19, %v684_v42  ;;  %v689_v59 = vadd.f32 %v687_v18, %v683_v17  ;;  %v860_v63 = vsel %vm387_vm3, %v857_v47, %v859_v32  ;;  %v952_v19 = vmul.f32 %v950_v27, %v1794_v40 }
  0xf7   : > { %v700_v34 = vpop.permute.xlu1 %699  ;;  %v698_v25 = vpop.permute.xlu0 %697  ;;  %v953_v18 = vmul.f32 %v950_v27, %v1810_v48 }
  0xf8   : > { %v704_v53 = vadd.f32 %v700_v34, %v690_v41  ;;  %v703_v54 = vadd.f32 %v698_v25, %v689_v59  ;;  %v958_v52 = vrot.slane %v952_v19, 3 }
  0xf9   : > { %v960_v20 = vrot.slane %v953_v18, 3 }
  0xfb   : > { %v714_v35 = vpop.permute.xlu1 %713  ;;  %v712_v39 = vpop.permute.xlu0 %711  ;;  %v961_v58 = vsel %vm489_vm4, %v958_v52, %v960_v20 }
  0xfc   : > { %v718_v31 = vadd.f32 %v714_v35, %v704_v53  ;;  %v717_v57 = vadd.f32 %v712_v39, %v703_v54 }
  0xff   : > { %v728_v29 = vpop.permute.xlu1 %727  ;;  %v726_v45 = vpop.permute.xlu0 %725 }
 0x100   : > { %v732_v61 = vadd.f32 %v728_v29, %v718_v31  ;;  %v731_v0 = vadd.f32 %v726_v45, %v717_v57  ;;  %v951_v29 = vmul.f32 %v950_v27, %v1797_v38 }
 0x102   : > { %v957_v21 = vrot.slane %v951_v29, 3 }
 0x103   : > { %v742_v46 = vpop.permute.xlu1 %741  ;;  %v740_v49 = vpop.permute.xlu0 %739 }
 0x104   : > { %v746_v1 = vadd.f32 %v742_v46, %v732_v61  ;;  %v745_v2 = vadd.f32 %v740_v49, %v731_v0  ;;  %v959_v44 = vsel %vm489_vm4, %v957_v21, %v958_v52 }
 0x106   : > { %v763_v12 = vadd.f32 %v759_v3, %v746_v1  ;;  %v762_v13 = vadd.f32 %v757_v4, %v745_v2 }
 0x107   : > { %v780_v55 = vpop.permute.xlu1 %779  ;;  %v778_v56 = vpop.permute.xlu0 %777 }
 0x108   : > { %v784_v23 = vadd.f32 %v780_v55, %v763_v12  ;;  %v783_v24 = vadd.f32 %v778_v56, %v762_v13 }
 0x10b   : > { %v801_v36 = vpop.permute.xlu1 %800  ;;  %v799_v37 = vpop.permute.xlu0 %798 }
 0x10c   : > { %v805_v60 = vadd.f32 %v801_v36, %v784_v23  ;;  %v804_v33 = vadd.f32 %v799_v37, %v783_v24  ;;  %v1051_v37 = vstv %s1310_s4 }
 0x10d   : > { %v1053_v3 = vmul.f32 %v1051_v37, %v1794_v40  ;;  %v1054_v4 = vmul.f32 %v1051_v37, %v1810_v48 }
 0x10f   : > { %v822_v6 = vpop.permute.xlu1 %821  ;;  %v820_v9 = vpop.permute.xlu0 %819  ;;  %v1059_v16 = vrot.slane %v1053_v3, 4  ;;  %v1061_v5 = vrot.slane %v1054_v4, 4 }
 0x110   : > { %v826_v34 = vadd.f32 %v822_v6, %v805_v60  ;;  %v825_v25 = vadd.f32 %v820_v9, %v804_v33  ;;  %v1052_v6 = vmul.f32 %v1051_v37, %v1797_v38 }
 0x111   : > { %v1062_v47 = vsel %vm591_vm5, %v1059_v16, %v1061_v5 }
 0x112   : > { %v1058_v22 = vrot.slane %v1052_v6, 4 }
 0x113   : > { %v843_v14 = vpop.permute.xlu1 %842  ;;  %v841_v15 = vpop.permute.xlu0 %840 }
 0x114   : > { %v847_v10 = vadd.f32 %v843_v14, %v826_v34  ;;  %v846_v62 = vadd.f32 %v841_v15, %v825_v25  ;;  %v1060_v48 = vsel %vm591_vm5, %v1058_v22, %v1059_v16 }
 0x116   : > { %v864_v39 = vadd.f32 %v860_v63, %v847_v10  ;;  %v863_v26 = vadd.f32 %v858_v28, %v846_v62 }
 0x117   : > { %v881_v50 = vpop.permute.xlu1 %880  ;;  %v879_v11 = vpop.permute.xlu0 %878 }
 0x118   : > { %v885_v45 = vadd.f32 %v881_v50, %v864_v39  ;;  %v884_v41 = vadd.f32 %v879_v11, %v863_v26 }
 0x11b   : > { %v902_v7 = vpop.permute.xlu1 %901  ;;  %v900_v35 = vpop.permute.xlu0 %899 }
 0x11c   : > { %v906_v46 = vadd.f32 %v902_v7, %v885_v45  ;;  %v905_v49 = vadd.f32 %v900_v35, %v884_v41 }
 0x11f   : > { %v923_v42 = vpop.permute.xlu1 %922  ;;  %v921_v17 = vpop.permute.xlu0 %920 }
 0x120   : > { %v927_v53 = vadd.f32 %v923_v42, %v906_v46  ;;  %v926_v54 = vadd.f32 %v921_v17, %v905_v49 }
 0x123   : > { %v944_v59 = vpop.permute.xlu1 %943  ;;  %v942_v43 = vpop.permute.xlu0 %941 }
 0x124   : > { %v948_v31 = vadd.f32 %v944_v59, %v927_v53  ;;  %v947_v57 = vadd.f32 %v942_v43, %v926_v54 }
 0x126   : > { %v965_v0 = vadd.f32 %v961_v58, %v948_v31  ;;  %v964_v36 = vadd.f32 %v959_v44, %v947_v57 }
 0x127   : > { %v982_v55 = vpop.permute.xlu1 %981  ;;  %v980_v56 = vpop.permute.xlu0 %979 }
 0x128   : > { %v986_v9 = vadd.f32 %v982_v55, %v965_v0  ;;  %v985_v12 = vadd.f32 %v980_v56, %v964_v36 }
 0x12b   : > { %v1003_v30 = vpop.permute.xlu1 %1002  ;;  %v1001_v61 = vpop.permute.xlu0 %1000 }
 0x12c   : > { %v1007_v13 = vadd.f32 %v1003_v30, %v986_v9  ;;  %v1006_v8 = vadd.f32 %v1001_v61, %v985_v12 }
 0x12f   : > { %v1024_v1 = vpop.permute.xlu1 %1023  ;;  %v1022_v2 = vpop.permute.xlu0 %1021 }
 0x130   : > { %v1028_v23 = vadd.f32 %v1024_v1, %v1007_v13  ;;  %v1027_v24 = vadd.f32 %v1022_v2, %v1006_v8 }
 0x133   : > { %v1045_v14 = vpop.permute.xlu1 %1044  ;;  %v1043_v15 = vpop.permute.xlu0 %1042 }
 0x134   : > { %v1049_v60 = vadd.f32 %v1045_v14, %v1028_v23  ;;  %v1048_v33 = vadd.f32 %v1043_v15, %v1027_v24 }
 0x136   : > { %v1066_v38 = vadd.f32 %v1062_v47, %v1049_v60  ;;  %v1065_v50 = vadd.f32 %v1060_v48, %v1048_v33 }
 0x137   : > { %v1083_v40 = vpop.permute.xlu1 %1082  ;;  %v1081_v32 = vpop.permute.xlu0 %1080 }
 0x138   : > { %v1087_v34 = vadd.f32 %v1083_v40, %v1066_v38  ;;  %v1086_v25 = vadd.f32 %v1081_v32, %v1065_v50 }
 0x13b   : > { %v1104_v51 = vpop.permute.xlu1 %1103  ;;  %v1102_v11 = vpop.permute.xlu0 %1101 }
 0x13c   : > { %v1108_v63 = vadd.f32 %v1104_v51, %v1087_v34  ;;  %v1107_v28 = vadd.f32 %v1102_v11, %v1086_v25 }
 0x13f   : > { %v1125_v10 = vpop.permute.xlu1 %1124  ;;  %v1123_v62 = vpop.permute.xlu0 %1122 }
 0x140   : > { %v1129_v7 = vadd.f32 %v1125_v10, %v1108_v63  ;;  %v1128_v35 = vadd.f32 %v1123_v62, %v1107_v28 }
 0x143   : > { %v1146_v39 = vpop.permute.xlu1 %1145  ;;  %v1144_v26 = vpop.permute.xlu0 %1143 }
 0x144   : > { %v1150_v27 = vadd.f32 %v1146_v39, %v1129_v7  ;;  %v1149_v42 = vadd.f32 %v1144_v26, %v1128_v35 }
 0x146   : > { %v1152_v17 = vmax.f32 %v1150_v27, 0.0  ;;  %v1151_v19 = vmax.f32 %v1149_v42, 0.0 }
 0x148   : > { %v1316_v18 = vmul.f32 -1.442695, %v1152_v17  ;;  %v1315_v29 = vmul.f32 -1.442695, %v1151_v19 }
 0x14a   : > { %1380 = vpow2.f32 %v1316_v18 }
 0x14b   : > { %1382 = vpow2.f32 %v1315_v29 }
 0x157   : > { %v1381_v45 = vpop.eup %1380 }
 0x158   : > { %v1383_v41 = vpop.eup %1382  ;;  %v1160_v59 = vadd.f32 1.0, %v1381_v45 }
 0x159   : > { %v1159_v43 = vadd.f32 1.0, %v1383_v41 }
 0x15a   : > { %1384 = vrcp.f32 %v1160_v59 }
 0x15b   : > { %1386 = vrcp.f32 %v1159_v43 }
 0x167   : > { %v1385_v46 = vpop.eup %1384 }
 0x168   : > { %v1387_v49 = vpop.eup %1386  ;;  %v1166_v52 = vmul.f32 %v1385_v46, %v1152_v17 }
 0x169   : > { %v1165_v20 = vmul.f32 %v1387_v49, %v1151_v19 }
 0x16a   : > { %1169 = vst.msk [vmem:[%s150_s8 + $0x8] sm:$0xff] %vm1167_vm6, %v1166_v52 }
 0x16b   : > { %1168 = vst.msk [vmem:[%s150_s8] sm:$0xff] %vm1167_vm6, %v1165_v20 }
 0x16c   : > { %1416 = shalt.err (!%p1413_p2)
}
 0x16d   : > { %s1417_s16 = scalar_lea.hbm %s2043_s24, 256  ;;  %s1421_s25 = scalar_lea.hbm %s2089_s2, 512 }
 0x16e   : > { %p1418_p3 = scmp.ne.s32.totalorder %s2043_s24, %s1417_s16  ;;  %p1422_p8 = scmp.lt.s32.totalorder %s2043_s24, %s2089_s2 }
 0x16f   : > { %p1423_p11 = scmp.lt.s32.totalorder %s1421_s25, %s1417_s16 }
 0x170   : > { %p1419_p4 = pnand %p1418_p3, %p1530_p5 }
 0x171   : > { %p1424_p9 = por %p1423_p11, %p1422_p8 }
 0x172   : > { %p1420_p7 = pneg %p1419_p4 }
 0x174   : > { %p1425_p10 = pnand %p1424_p9, %p1420_p7 }
 0x176   : > { %1428 = shalt.err (!%p1425_p10)
}
 0x177   : > { %s1475_s4 = smov 128   ;;  %s1476_s5 = smov 8  }
 0x178   : > { %1328 = dma.vmem_to_hbm [thread:$0]  (%p1530_p5), %s2045_s14, 256, %s2043_s24, %s2047_s13, %s1475_s4, %s1475_s4, %s1476_s5  }
 0x179 PF: > { %p1340_p12 = scmp.ge.s32.totalorder %s1467_s12, 2  ;;  %s1199_s6 = sand.u32 1, %s1455_s9  }
 0x17a   : > { %s1200_s7 = scalar_lea.sflag [#allocation3], %s1199_s6 }
 0x17b   : > { %p1335_p13 = pnand %p1340_p12, %p1534_p6 }
 0x17d   : > { %p1336_p0 = pneg %p1335_p13 }
 0x17f   : > { %1450 = dma.done.wait (%p1336_p0), %s1200_s7, 256  }
 0x180   : > { %1452 = vsyncadd (%p1336_p0), %s1200_s7, 4294967040  ;;  %p13_p1 = scmp.ge.s32.totalorder %s1517_s15, 4   ;;  %s2093_s9 = smov %s1459_s10 }
 0x181   : > { %s2094_s10 = smov %s1463_s11  ;;  %s2095_s11 = smov %s1528_s18 }
 0x182   : > { %s2096_s12 = smov %s1517_s15  ;;  %15 = sbr.rel (!%p13_p1) target bundleno = 4 (0x4), region = 68 }
 0x187   :  { %1205 = vsyncpa [#allocation3], 1 }
 0x188   :  { %1207 = vsyncpa [#allocation3 + $0x1], 1 }
 0x189   :  { %1208 = vsyncpa [#allocation4], 1 }
 0x18a   :  { %1210 = vsyncpa [#allocation4 + $0x1], 1 }

</bundles_post_ra>
